<compile_context>
chip_gen: v6e
topology: v6e:2x2x1
jax: 0.10.0
libtpu: 0.0.40
codegen_flags: <defaults>
</compile_context>

<pallas_src>
import jax
import jax.numpy as jnp
from jax import lax
from jax.experimental import pallas as pl
from jax.experimental.pallas import tpu as pltpu


# ----------------------------------------------------------------------------
# Pallas kernel: fused bidirectional recurrence + running max + final tanh
# ----------------------------------------------------------------------------
def _bilstm_pool_kernel(gxf_ref,      # (Tc, Bt, 4H) bf16: x@Wih_f, this time chunk
                        gxb_ref,      # (Tc, Bt, 4H) bf16: x@Wih_b, mirrored chunk
                        bias_ref,     # (1, 8H) f32: [b_f | b_b] (ih+hh folded)
                        whh_ref,      # (2H, 8H) bf16: block-diag [[Whh_f,0],[0,Whh_b]]
                        out_ref,      # (Bt, 2H) f32
                        hf_scr, cf_scr, hb_scr, cb_scr, mf_scr, mb_scr):
    k = pl.program_id(1)
    num_chunks = pl.num_programs(1)
    Tc, Bt, G = gxf_ref.shape
    H = G // 4

    @pl.when(k == 0)
    def _():
        zero = jnp.zeros_like(hf_scr)
        hf_scr[...] = zero
        cf_scr[...] = zero
        hb_scr[...] = zero
        cb_scr[...] = zero
        # h = o*tanh(c) lies in (-1, 1), so -1.0 is a safe running-max identity;
        # tanh is monotone, hence tanh(max_t h_t) == max_t tanh(h_t).
        # NOTE: this invariant breaks if any projection/activation is added.
        mf_scr[...] = jnp.full_like(mf_scr, -1.0)
        mb_scr[...] = jnp.full_like(mb_scr, -1.0)

    # Hoist weight / bias loads out of the recurrence.
    whh = whh_ref[...]                    # (2H, 8H) bf16
    b_f = bias_ref[:, :G]                 # (1, 4H) f32
    b_b = bias_ref[:, G:]                 # (1, 4H) f32

    def gates_to_hc(gates, c):
        # PyTorch gate order: i, f, g, o.  Sigmoid on the full (Bt, 4H) slab
        # (keeps full lane width even when H < 128); tanh on the g slice only.
        sig = jax.nn.sigmoid(gates)
        i = sig[:, 0 * H:1 * H]
        f = sig[:, 1 * H:2 * H]
        o = sig[:, 3 * H:4 * H]
        g = jnp.tanh(gates[:, 2 * H:3 * H])
        c_new = f * c + i * g
        h_new = o * jnp.tanh(c_new)
        return h_new, c_new

    # Fused loop: forward local step s and backward local step Tc-1-s in the
    # same iteration so the two independent chains hide each other's latency.
    def step(s, carry):
        h_f, c_f, h_b, c_b, mx_f, mx_b = carry
        row_f = gxf_ref[s]                # (Bt, 4H) bf16
        row_b = gxb_ref[Tc - 1 - s]       # (Bt, 4H) bf16 (reversed within chunk)
        # One MXU push for both directions: (Bt, 2H) @ block-diag (2H, 8H).
        h2 = jnp.concatenate([h_f, h_b], axis=1).astype(jnp.bfloat16)
        hh = jnp.dot(h2, whh, preferred_element_type=jnp.float32)   # (Bt, 8H)
        gates_f = row_f.astype(jnp.float32) + hh[:, :G] + b_f
        gates_b = row_b.astype(jnp.float32) + hh[:, G:] + b_b
        h_f, c_f = gates_to_hc(gates_f, c_f)
        h_b, c_b = gates_to_hc(gates_b, c_b)
        mx_f = jnp.maximum(mx_f, h_f)
        mx_b = jnp.maximum(mx_b, h_b)
        return h_f, c_f, h_b, c_b, mx_f, mx_b

    carry0 = (hf_scr[...], cf_scr[...], hb_scr[...], cb_scr[...],
              mf_scr[...], mb_scr[...])
    # TODO(synk): sweep the unroll factor (2-8) per TPU generation and check
    # the bundle dump for vreg spills once Bt / H grow.
    unroll = True if Tc <= 16 else 4
    h_f, c_f, h_b, c_b, mx_f, mx_b = lax.fori_loop(
        0, Tc, step, carry0, unroll=unroll)

    # Persist carries to VMEM scratch for the next time chunk of this batch tile.
    hf_scr[...] = h_f
    cf_scr[...] = c_f
    hb_scr[...] = h_b
    cb_scr[...] = c_b
    mf_scr[...] = mx_f
    mb_scr[...] = mx_b

    @pl.when(k == num_chunks - 1)
    def _():
        # Single tanh at the end; channels [:H] = forward dir, [H:] = backward.
        out_ref[:, :H] = jnp.tanh(mx_f)
        out_ref[:, H:] = jnp.tanh(mx_b)


# ----------------------------------------------------------------------------
# Wrapper helpers
# ----------------------------------------------------------------------------
def _pick_batch_tile(B):
    # Prefer >=2 batch blocks (so the "parallel" axis shards across TensorCores
    # on v7x megacore) with a sublane-friendly (multiple-of-8) tile; otherwise
    # fall back to the whole batch (correct, but no megacore split).
    for cand in (256, 128, 64, 32, 16, 8):
        if B % cand == 0 and B // cand >= 2:
            return cand
    return B


def _pick_time_chunk(T):
    # Stream the time axis in chunks so the resident gate slab is bounded
    # independent of T (v7x has only 64 MiB VMEM).  Chunk must divide T.
    if T <= 128:
        return T
    for cand in range(128, 0, -1):
        if T % cand == 0:
            return cand
    return T


def _vmem_limit_bytes():
    # Generation-aware budget: ~85% of physical VMEM, capped at 110 MiB
    # (128 MiB on v5e/v6e, 64 MiB on v7x), leaving headroom for compiler
    # scratch and the double-buffered input tiles.
    default = 64 * 1024 * 1024
    try:
        cap = getattr(pltpu.get_tpu_info(), "vmem_capacity_bytes", default)
    except Exception:
        cap = default
    return int(max(32 * 1024 * 1024, min(cap * 0.85, 110 * 1024 * 1024)))


# ----------------------------------------------------------------------------
# Wrapper: embedding gather + hoisted input projection (XLA GEMM) + Pallas call
# ----------------------------------------------------------------------------
def bilstm_rcnn_forward(token_ids, word_embeddings, params):
    B, T = token_ids.shape
    H = params["whh_f"].shape[0]
    G = 4 * H

    # Embedding gather directly into time-major (T, B, E) layout; dropout
    # layers are identity at inference.
    x_tm = jnp.take(word_embeddings, token_ids.T, axis=0)            # (T, B, E)

    # Hoisted input projection for BOTH directions as one MXU GEMM (bf16
    # operands, f32 accumulation); stored as bf16 to halve the HBM round trip.
    # Biases are added in f32 inside the kernel.
    wih_all = jnp.concatenate([params["wih_f"], params["wih_b"]], axis=1)  # (E, 8H)
    gates_x = jnp.einsum(
        "tbe,eg->tbg",
        x_tm.astype(jnp.bfloat16), wih_all.astype(jnp.bfloat16),
        preferred_element_type=jnp.float32).astype(jnp.bfloat16)     # (T, B, 8H)
    gx_f = gates_x[..., :G]                                          # (T, B, 4H)
    gx_b = gates_x[..., G:]                                          # (T, B, 4H)
    # TODO(synk): for very large T*B the gates_x HBM round trip could be removed
    # entirely by fusing this GEMM into the kernel via pltpu.emit_pipeline over
    # time chunks of x_tm.

    b_all = jnp.concatenate([params["b_f"], params["b_b"]],
                            axis=1).astype(jnp.float32)              # (1, 8H)

    # Block-diagonal recurrent weight so both directions share one per-step
    # (Bt, 2H) @ (2H, 8H) MXU push.
    zeros = jnp.zeros((H, G), jnp.float32)
    whh_blk = jnp.concatenate([
        jnp.concatenate([params["whh_f"], zeros], axis=1),
        jnp.concatenate([zeros, params["whh_b"]], axis=1),
    ], axis=0).astype(jnp.bfloat16)                                  # (2H, 8H)

    Bt = _pick_batch_tile(B)
    Tc = _pick_time_chunk(T)
    num_chunks = T // Tc
    grid = (pl.cdiv(B, Bt), num_chunks)

    return pl.pallas_call(
        _bilstm_pool_kernel,
        out_shape=jax.ShapeDtypeStruct((B, 2 * H), jnp.float32),
        grid_spec=pltpu.PrefetchScalarGridSpec(
            num_scalar_prefetch=0,
            grid=grid,
            in_specs=[
                # forward gates stream chunks 0 -> K-1
                pl.BlockSpec((Tc, Bt, G), lambda i, k: (k, i, 0)),
                # backward gates stream chunks K-1 -> 0 (toward the middle)
                pl.BlockSpec((Tc, Bt, G),
                             lambda i, k: (num_chunks - 1 - k, i, 0)),
                pl.BlockSpec((1, 2 * G), lambda i, k: (0, 0)),
                pl.BlockSpec((2 * H, 2 * G), lambda i, k: (0, 0)),
            ],
            out_specs=pl.BlockSpec((Bt, 2 * H), lambda i, k: (i, 0)),
            scratch_shapes=[pltpu.VMEM((Bt, H), jnp.float32)] * 6,
        ),
        compiler_params=pltpu.CompilerParams(
            dimension_semantics=("parallel", "arbitrary"),
            vmem_limit_bytes=_vmem_limit_bytes()),
    )(gx_f, gx_b, b_all, whh_blk)


# ----------------------------------------------------------------------------
# Pure-JAX f32 reference (mirrors torch.nn.LSTM bidirectional semantics)
# ----------------------------------------------------------------------------
def bilstm_rcnn_reference(token_ids, word_embeddings, params):
    B, T = token_ids.shape
    H = params["whh_f"].shape[0]
    x = jnp.take(word_embeddings, token_ids, axis=0).astype(jnp.float32)  # (B,T,E)

    def run_dir(wih, whh, b, reverse):
        def cell(carry, x_t):
            h, c = carry
            g = x_t @ wih + h @ whh + b
            i = jax.nn.sigmoid(g[:, 0 * H:1 * H])
            f = jax.nn.sigmoid(g[:, 1 * H:2 * H])
            gg = jnp.tanh(g[:, 2 * H:3 * H])
            o = jax.nn.sigmoid(g[:, 3 * H:4 * H])
            c = f * c + i * gg
            h = o * jnp.tanh(c)
            return (h, c), h
        h0 = jnp.zeros((B, H), jnp.float32)
        xs = jnp.transpose(x, (1, 0, 2))            # (T, B, E)
        _, hs = lax.scan(cell, (h0, h0), xs, reverse=reverse)
        return hs                                    # (T, B, H)

    hs_f = run_dir(params["wih_f"], params["whh_f"], params["b_f"], False)
    hs_b = run_dir(params["wih_b"], params["whh_b"], params["b_b"], True)
    out = jnp.concatenate([hs_f, hs_b], axis=-1)     # (T, B, 2H)
    out = jnp.tanh(out)
    return jnp.max(out, axis=0)                      # (B, 2H)


# ----------------------------------------------------------------------------
def make_params(key, vocab, embed_size, hidden):
    ks = jax.random.split(key, 7)
    s = 1.0 / jnp.sqrt(hidden)
    u = lambda k, shp: jax.random.uniform(k, shp, jnp.float32, -s, s)
    word_embeddings = jax.random.normal(ks[0], (vocab, embed_size), jnp.float32)
    params = dict(
        # stored pre-transposed: (in_dim, 4H) so the projection is x @ W
        wih_f=u(ks[1], (embed_size, 4 * hidden)),
        whh_f=u(ks[2], (hidden, 4 * hidden)),
        b_f=u(ks[3], (1, 4 * hidden)),               # b_ih + b_hh folded together
        wih_b=u(ks[4], (embed_size, 4 * hidden)),
        whh_b=u(ks[5], (hidden, 4 * hidden)),
        b_b=u(ks[6], (1, 4 * hidden)),
    )
    return word_embeddings, params


if __name__ == "__main__":
    VOCAB, EMBED, HIDDEN = 50, 32, 32
    B, T = 2, 8

    key = jax.random.PRNGKey(0)
    k_emb, k_ids = jax.random.split(key)
    word_embeddings, params = make_params(k_emb, VOCAB, EMBED, HIDDEN)
    token_ids = jax.random.randint(k_ids, (B, T), 0, VOCAB, dtype=jnp.int32)

    out = bilstm_rcnn_forward(token_ids, word_embeddings, params)
    out = jax.block_until_ready(out)

    ref = jax.block_until_ready(
        bilstm_rcnn_reference(token_ids, word_embeddings, params))

    assert out.shape == (B, 2 * HIDDEN), out.shape
    # bf16 matmul operands + bf16-stored gate preactivations (f32 accumulation)
    # vs the pure-f32 reference.
    assert jnp.allclose(out, ref, atol=3e-2, rtol=3e-2), (
        float(jnp.max(jnp.abs(out - ref))))

    print("KERNEL_OK")
</pallas_src>

<mosaic_0001>
module attributes {stable_mosaic.version = 11 : i64} {
  func.func @_bilstm_pool_kernel(%arg0: i32, %arg1: i32, %arg2: memref<8x2x128xbf16, #tpu.memory_space<vmem>>, %arg3: memref<8x2x128xbf16, #tpu.memory_space<vmem>>, %arg4: memref<1x256xf32, #tpu.memory_space<vmem>>, %arg5: memref<64x256xbf16, #tpu.memory_space<vmem>>, %arg6: memref<2x64xf32, #tpu.memory_space<vmem>>, %arg7: memref<2x32xf32, #tpu.memory_space<vmem>>, %arg8: memref<2x32xf32, #tpu.memory_space<vmem>>, %arg9: memref<2x32xf32, #tpu.memory_space<vmem>>, %arg10: memref<2x32xf32, #tpu.memory_space<vmem>>, %arg11: memref<2x32xf32, #tpu.memory_space<vmem>>, %arg12: memref<2x32xf32, #tpu.memory_space<vmem>>) attributes {dimension_semantics = [#tpu.dimension_semantics<parallel>, #tpu.dimension_semantics<arbitrary>], iteration_bounds = array<i64: 1, 1>, scalar_prefetch = 0 : i64, scratch_operands = 6 : i64, tpu.core_type = #tpu.core_type<tc>, window_params = [{transform_indices = @transform_0, window_bounds = array<i64: 8, 2, 128>}, {transform_indices = @transform_1, window_bounds = array<i64: 8, 2, 128>}, {pipeline_mode = #tpu.pipeline_mode<synchronous>, transform_indices = @transform_2, window_bounds = array<i64: 1, 256>}, {pipeline_mode = #tpu.pipeline_mode<synchronous>, transform_indices = @transform_3, window_bounds = array<i64: 64, 256>}, {transform_indices = @transform_4, window_bounds = array<i64: 2, 64>}]} {
    %c0_i32 = arith.constant 0 : i32
    %0 = arith.cmpi eq, %arg1, %c0_i32 : i32
    %1 = arith.extui %0 : i1 to i32
    %c0_i32_0 = arith.constant 0 : i32
    %2 = arith.cmpi ne, %1, %c0_i32_0 : i32
    scf.if %2 {
      %cst_95 = arith.constant 0.000000e+00 : f32
      %437 = vector.broadcast %cst_95 : f32 to vector<2x32xf32>
      %c0_96 = arith.constant 0 : index
      %c0_97 = arith.constant 0 : index
      %438 = vector.load %arg7[%c0_96, %c0_97] : memref<2x32xf32, #tpu.memory_space<vmem>>, vector<2x32xf32>
      tpu.vector_store %arg7[%c0_96, %c0_97], %437 {strides = array<i32>} : memref<2x32xf32, #tpu.memory_space<vmem>>, vector<2x32xf32>,
      %c0_98 = arith.constant 0 : index
      %c0_99 = arith.constant 0 : index
      %439 = vector.load %arg8[%c0_98, %c0_99] : memref<2x32xf32, #tpu.memory_space<vmem>>, vector<2x32xf32>
      tpu.vector_store %arg8[%c0_98, %c0_99], %437 {strides = array<i32>} : memref<2x32xf32, #tpu.memory_space<vmem>>, vector<2x32xf32>,
      %c0_100 = arith.constant 0 : index
      %c0_101 = arith.constant 0 : index
      %440 = vector.load %arg9[%c0_100, %c0_101] : memref<2x32xf32, #tpu.memory_space<vmem>>, vector<2x32xf32>
      tpu.vector_store %arg9[%c0_100, %c0_101], %437 {strides = array<i32>} : memref<2x32xf32, #tpu.memory_space<vmem>>, vector<2x32xf32>,
      %c0_102 = arith.constant 0 : index
      %c0_103 = arith.constant 0 : index
      %441 = vector.load %arg10[%c0_102, %c0_103] : memref<2x32xf32, #tpu.memory_space<vmem>>, vector<2x32xf32>
      tpu.vector_store %arg10[%c0_102, %c0_103], %437 {strides = array<i32>} : memref<2x32xf32, #tpu.memory_space<vmem>>, vector<2x32xf32>,
      %cst_104 = arith.constant -1.000000e+00 : f32
      %442 = vector.broadcast %cst_104 : f32 to vector<2x32xf32>
      %c0_105 = arith.constant 0 : index
      %c0_106 = arith.constant 0 : index
      %443 = vector.load %arg11[%c0_105, %c0_106] : memref<2x32xf32, #tpu.memory_space<vmem>>, vector<2x32xf32>
      tpu.vector_store %arg11[%c0_105, %c0_106], %442 {strides = array<i32>} : memref<2x32xf32, #tpu.memory_space<vmem>>, vector<2x32xf32>,
      %cst_107 = arith.constant -1.000000e+00 : f32
      %444 = vector.broadcast %cst_107 : f32 to vector<2x32xf32>
      %c0_108 = arith.constant 0 : index
      %c0_109 = arith.constant 0 : index
      %445 = vector.load %arg12[%c0_108, %c0_109] : memref<2x32xf32, #tpu.memory_space<vmem>>, vector<2x32xf32>
      tpu.vector_store %arg12[%c0_108, %c0_109], %444 {strides = array<i32>} : memref<2x32xf32, #tpu.memory_space<vmem>>, vector<2x32xf32>,
    } else {
    }
    %c0 = arith.constant 0 : index
    %c0_1 = arith.constant 0 : index
    %3 = vector.load %arg5[%c0, %c0_1] : memref<64x256xbf16, #tpu.memory_space<vmem>>, vector<64x256xbf16>
    %c0_2 = arith.constant 0 : index
    %c0_3 = arith.constant 0 : index
    %4 = vector.load %arg4[%c0_2, %c0_3] : memref<1x256xf32, #tpu.memory_space<vmem>>, vector<1x128xf32>
    %c0_4 = arith.constant 0 : index
    %c128 = arith.constant 128 : index
    %5 = vector.load %arg4[%c0_4, %c128] : memref<1x256xf32, #tpu.memory_space<vmem>>, vector<1x128xf32>
    %c0_5 = arith.constant 0 : index
    %c0_6 = arith.constant 0 : index
    %6 = vector.load %arg7[%c0_5, %c0_6] : memref<2x32xf32, #tpu.memory_space<vmem>>, vector<2x32xf32>
    %c0_7 = arith.constant 0 : index
    %c0_8 = arith.constant 0 : index
    %7 = vector.load %arg8[%c0_7, %c0_8] : memref<2x32xf32, #tpu.memory_space<vmem>>, vector<2x32xf32>
    %c0_9 = arith.constant 0 : index
    %c0_10 = arith.constant 0 : index
    %8 = vector.load %arg9[%c0_9, %c0_10] : memref<2x32xf32, #tpu.memory_space<vmem>>, vector<2x32xf32>
    %c0_11 = arith.constant 0 : index
    %c0_12 = arith.constant 0 : index
    %9 = vector.load %arg10[%c0_11, %c0_12] : memref<2x32xf32, #tpu.memory_space<vmem>>, vector<2x32xf32>
    %c0_13 = arith.constant 0 : index
    %c0_14 = arith.constant 0 : index
    %10 = vector.load %arg11[%c0_13, %c0_14] : memref<2x32xf32, #tpu.memory_space<vmem>>, vector<2x32xf32>
    %c0_15 = arith.constant 0 : index
    %c0_16 = arith.constant 0 : index
    %11 = vector.load %arg12[%c0_15, %c0_16] : memref<2x32xf32, #tpu.memory_space<vmem>>, vector<2x32xf32>
    %c0_i32_17 = arith.constant 0 : i32
    %12 = arith.index_cast %c0_i32_17 : i32 to index
    %c0_18 = arith.constant 0 : index
    %c0_19 = arith.constant 0 : index
    %13 = vector.load %arg2[%12, %c0_18, %c0_19] : memref<8x2x128xbf16, #tpu.memory_space<vmem>>, vector<1x2x128xbf16>
    %14 = vector.shape_cast %13 : vector<1x2x128xbf16> to vector<2x128xbf16>
    %c7_i32 = arith.constant 7 : i32
    %15 = arith.subi %c7_i32, %c0_i32_17 : i32
    %16 = arith.index_cast %15 : i32 to index
    %c0_20 = arith.constant 0 : index
    %c0_21 = arith.constant 0 : index
    %17 = vector.load %arg3[%16, %c0_20, %c0_21] : memref<8x2x128xbf16, #tpu.memory_space<vmem>>, vector<1x2x128xbf16>
    %18 = vector.shape_cast %17 : vector<1x2x128xbf16> to vector<2x128xbf16>
    %19 = tpu.concatenate %6, %8 in 1 : vector<2x32xf32>, vector<2x32xf32> -> vector<2x64xf32>
    %20 = arith.truncf %19 : vector<2x64xf32> to vector<2x64xbf16>
    %cst = arith.constant dense<0.000000e+00> : vector<2x256xf32>
    %21 = tpu.matmul %20, %3, %cst {dimension_numbers = #tpu.dot_dimension_numbers<[1], [0], [0], [1], [0, 0, 1, 1], [], []>} : vector<2x64xbf16>, vector<64x256xbf16>, vector<2x256xf32> -> vector<2x256xf32>
    %22 = arith.extf %14 : vector<2x128xbf16> to vector<2x128xf32>
    %23 = vector.extract_strided_slice %21 {offsets = [0, 0], sizes = [2, 128], strides = [1, 1]} : vector<2x256xf32> to vector<2x128xf32>
    %24 = arith.addf %22, %23 : vector<2x128xf32>
    %25 = vector.broadcast %4 : vector<1x128xf32> to vector<2x128xf32>
    %26 = arith.addf %24, %25 : vector<2x128xf32>
    %27 = arith.extf %18 : vector<2x128xbf16> to vector<2x128xf32>
    %28 = vector.extract_strided_slice %21 {offsets = [0, 128], sizes = [2, 128], strides = [1, 1]} : vector<2x256xf32> to vector<2x128xf32>
    %29 = arith.addf %27, %28 : vector<2x128xf32>
    %30 = vector.broadcast %5 : vector<1x128xf32> to vector<2x128xf32>
    %31 = arith.addf %29, %30 : vector<2x128xf32>
    %32 = arith.negf %26 : vector<2x128xf32>
    %33 = math.exp %32 : vector<2x128xf32>
    %cst_22 = arith.constant 1.000000e+00 : f32
    %34 = vector.broadcast %cst_22 : f32 to vector<2x128xf32>
    %35 = arith.addf %34, %33 : vector<2x128xf32>
    %36 = arith.divf %34, %35 : vector<2x128xf32>
    %37 = vector.extract_strided_slice %36 {offsets = [0, 0], sizes = [2, 32], strides = [1, 1]} : vector<2x128xf32> to vector<2x32xf32>
    %38 = vector.extract_strided_slice %36 {offsets = [0, 32], sizes = [2, 32], strides = [1, 1]} : vector<2x128xf32> to vector<2x32xf32>
    %39 = vector.extract_strided_slice %36 {offsets = [0, 96], sizes = [2, 32], strides = [1, 1]} : vector<2x128xf32> to vector<2x32xf32>
    %40 = vector.extract_strided_slice %26 {offsets = [0, 64], sizes = [2, 32], strides = [1, 1]} : vector<2x128xf32> to vector<2x32xf32>
    %41 = math.tanh %40 : vector<2x32xf32>
    %42 = arith.mulf %38, %7 : vector<2x32xf32>
    %43 = arith.mulf %37, %41 : vector<2x32xf32>
    %44 = arith.addf %42, %43 : vector<2x32xf32>
    %45 = math.tanh %44 : vector<2x32xf32>
    %46 = arith.mulf %39, %45 : vector<2x32xf32>
    %47 = arith.negf %31 : vector<2x128xf32>
    %48 = math.exp %47 : vector<2x128xf32>
    %cst_23 = arith.constant 1.000000e+00 : f32
    %49 = vector.broadcast %cst_23 : f32 to vector<2x128xf32>
    %50 = arith.addf %49, %48 : vector<2x128xf32>
    %51 = arith.divf %49, %50 : vector<2x128xf32>
    %52 = vector.extract_strided_slice %51 {offsets = [0, 0], sizes = [2, 32], strides = [1, 1]} : vector<2x128xf32> to vector<2x32xf32>
    %53 = vector.extract_strided_slice %51 {offsets = [0, 32], sizes = [2, 32], strides = [1, 1]} : vector<2x128xf32> to vector<2x32xf32>
    %54 = vector.extract_strided_slice %51 {offsets = [0, 96], sizes = [2, 32], strides = [1, 1]} : vector<2x128xf32> to vector<2x32xf32>
    %55 = vector.extract_strided_slice %31 {offsets = [0, 64], sizes = [2, 32], strides = [1, 1]} : vector<2x128xf32> to vector<2x32xf32>
    %56 = math.tanh %55 : vector<2x32xf32>
    %57 = arith.mulf %53, %9 : vector<2x32xf32>
    %58 = arith.mulf %52, %56 : vector<2x32xf32>
    %59 = arith.addf %57, %58 : vector<2x32xf32>
    %60 = math.tanh %59 : vector<2x32xf32>
    %61 = arith.mulf %54, %60 : vector<2x32xf32>
    %62 = arith.maximumf %10, %46 : vector<2x32xf32>
    %63 = arith.maximumf %11, %61 : vector<2x32xf32>
    %c1_i32 = arith.constant 1 : i32
    %64 = arith.index_cast %c1_i32 : i32 to index
    %c0_24 = arith.constant 0 : index
    %c0_25 = arith.constant 0 : index
    %65 = vector.load %arg2[%64, %c0_24, %c0_25] : memref<8x2x128xbf16, #tpu.memory_space<vmem>>, vector<1x2x128xbf16>
    %66 = vector.shape_cast %65 : vector<1x2x128xbf16> to vector<2x128xbf16>
    %c7_i32_26 = arith.constant 7 : i32
    %67 = arith.subi %c7_i32_26, %c1_i32 : i32
    %68 = arith.index_cast %67 : i32 to index
    %c0_27 = arith.constant 0 : index
    %c0_28 = arith.constant 0 : index
    %69 = vector.load %arg3[%68, %c0_27, %c0_28] : memref<8x2x128xbf16, #tpu.memory_space<vmem>>, vector<1x2x128xbf16>
    %70 = vector.shape_cast %69 : vector<1x2x128xbf16> to vector<2x128xbf16>
    %71 = tpu.concatenate %46, %61 in 1 : vector<2x32xf32>, vector<2x32xf32> -> vector<2x64xf32>
    %72 = arith.truncf %71 : vector<2x64xf32> to vector<2x64xbf16>
    %cst_29 = arith.constant dense<0.000000e+00> : vector<2x256xf32>
    %73 = tpu.matmul %72, %3, %cst_29 {dimension_numbers = #tpu.dot_dimension_numbers<[1], [0], [0], [1], [0, 0, 1, 1], [], []>} : vector<2x64xbf16>, vector<64x256xbf16>, vector<2x256xf32> -> vector<2x256xf32>
    %74 = arith.extf %66 : vector<2x128xbf16> to vector<2x128xf32>
    %75 = vector.extract_strided_slice %73 {offsets = [0, 0], sizes = [2, 128], strides = [1, 1]} : vector<2x256xf32> to vector<2x128xf32>
    %76 = arith.addf %74, %75 : vector<2x128xf32>
    %77 = vector.broadcast %4 : vector<1x128xf32> to vector<2x128xf32>
    %78 = arith.addf %76, %77 : vector<2x128xf32>
    %79 = arith.extf %70 : vector<2x128xbf16> to vector<2x128xf32>
    %80 = vector.extract_strided_slice %73 {offsets = [0, 128], sizes = [2, 128], strides = [1, 1]} : vector<2x256xf32> to vector<2x128xf32>
    %81 = arith.addf %79, %80 : vector<2x128xf32>
    %82 = vector.broadcast %5 : vector<1x128xf32> to vector<2x128xf32>
    %83 = arith.addf %81, %82 : vector<2x128xf32>
    %84 = arith.negf %78 : vector<2x128xf32>
    %85 = math.exp %84 : vector<2x128xf32>
    %cst_30 = arith.constant 1.000000e+00 : f32
    %86 = vector.broadcast %cst_30 : f32 to vector<2x128xf32>
    %87 = arith.addf %86, %85 : vector<2x128xf32>
    %88 = arith.divf %86, %87 : vector<2x128xf32>
    %89 = vector.extract_strided_slice %88 {offsets = [0, 0], sizes = [2, 32], strides = [1, 1]} : vector<2x128xf32> to vector<2x32xf32>
    %90 = vector.extract_strided_slice %88 {offsets = [0, 32], sizes = [2, 32], strides = [1, 1]} : vector<2x128xf32> to vector<2x32xf32>
    %91 = vector.extract_strided_slice %88 {offsets = [0, 96], sizes = [2, 32], strides = [1, 1]} : vector<2x128xf32> to vector<2x32xf32>
    %92 = vector.extract_strided_slice %78 {offsets = [0, 64], sizes = [2, 32], strides = [1, 1]} : vector<2x128xf32> to vector<2x32xf32>
    %93 = math.tanh %92 : vector<2x32xf32>
    %94 = arith.mulf %90, %44 : vector<2x32xf32>
    %95 = arith.mulf %89, %93 : vector<2x32xf32>
    %96 = arith.addf %94, %95 : vector<2x32xf32>
    %97 = math.tanh %96 : vector<2x32xf32>
    %98 = arith.mulf %91, %97 : vector<2x32xf32>
    %99 = arith.negf %83 : vector<2x128xf32>
    %100 = math.exp %99 : vector<2x128xf32>
    %cst_31 = arith.constant 1.000000e+00 : f32
    %101 = vector.broadcast %cst_31 : f32 to vector<2x128xf32>
    %102 = arith.addf %101, %100 : vector<2x128xf32>
    %103 = arith.divf %101, %102 : vector<2x128xf32>
    %104 = vector.extract_strided_slice %103 {offsets = [0, 0], sizes = [2, 32], strides = [1, 1]} : vector<2x128xf32> to vector<2x32xf32>
    %105 = vector.extract_strided_slice %103 {offsets = [0, 32], sizes = [2, 32], strides = [1, 1]} : vector<2x128xf32> to vector<2x32xf32>
    %106 = vector.extract_strided_slice %103 {offsets = [0, 96], sizes = [2, 32], strides = [1, 1]} : vector<2x128xf32> to vector<2x32xf32>
    %107 = vector.extract_strided_slice %83 {offsets = [0, 64], sizes = [2, 32], strides = [1, 1]} : vector<2x128xf32> to vector<2x32xf32>
    %108 = math.tanh %107 : vector<2x32xf32>
    %109 = arith.mulf %105, %59 : vector<2x32xf32>
    %110 = arith.mulf %104, %108 : vector<2x32xf32>
    %111 = arith.addf %109, %110 : vector<2x32xf32>
    %112 = math.tanh %111 : vector<2x32xf32>
    %113 = arith.mulf %106, %112 : vector<2x32xf32>
    %114 = arith.maximumf %62, %98 : vector<2x32xf32>
    %115 = arith.maximumf %63, %113 : vector<2x32xf32>
    %c2_i32 = arith.constant 2 : i32
    %116 = arith.index_cast %c2_i32 : i32 to index
    %c0_32 = arith.constant 0 : index
    %c0_33 = arith.constant 0 : index
    %117 = vector.load %arg2[%116, %c0_32, %c0_33] : memref<8x2x128xbf16, #tpu.memory_space<vmem>>, vector<1x2x128xbf16>
    %118 = vector.shape_cast %117 : vector<1x2x128xbf16> to vector<2x128xbf16>
    %c7_i32_34 = arith.constant 7 : i32
    %119 = arith.subi %c7_i32_34, %c2_i32 : i32
    %120 = arith.index_cast %119 : i32 to index
    %c0_35 = arith.constant 0 : index
    %c0_36 = arith.constant 0 : index
    %121 = vector.load %arg3[%120, %c0_35, %c0_36] : memref<8x2x128xbf16, #tpu.memory_space<vmem>>, vector<1x2x128xbf16>
    %122 = vector.shape_cast %121 : vector<1x2x128xbf16> to vector<2x128xbf16>
    %123 = tpu.concatenate %98, %113 in 1 : vector<2x32xf32>, vector<2x32xf32> -> vector<2x64xf32>
    %124 = arith.truncf %123 : vector<2x64xf32> to vector<2x64xbf16>
    %cst_37 = arith.constant dense<0.000000e+00> : vector<2x256xf32>
    %125 = tpu.matmul %124, %3, %cst_37 {dimension_numbers = #tpu.dot_dimension_numbers<[1], [0], [0], [1], [0, 0, 1, 1], [], []>} : vector<2x64xbf16>, vector<64x256xbf16>, vector<2x256xf32> -> vector<2x256xf32>
    %126 = arith.extf %118 : vector<2x128xbf16> to vector<2x128xf32>
    %127 = vector.extract_strided_slice %125 {offsets = [0, 0], sizes = [2, 128], strides = [1, 1]} : vector<2x256xf32> to vector<2x128xf32>
    %128 = arith.addf %126, %127 : vector<2x128xf32>
    %129 = vector.broadcast %4 : vector<1x128xf32> to vector<2x128xf32>
    %130 = arith.addf %128, %129 : vector<2x128xf32>
    %131 = arith.extf %122 : vector<2x128xbf16> to vector<2x128xf32>
    %132 = vector.extract_strided_slice %125 {offsets = [0, 128], sizes = [2, 128], strides = [1, 1]} : vector<2x256xf32> to vector<2x128xf32>
    %133 = arith.addf %131, %132 : vector<2x128xf32>
    %134 = vector.broadcast %5 : vector<1x128xf32> to vector<2x128xf32>
    %135 = arith.addf %133, %134 : vector<2x128xf32>
    %136 = arith.negf %130 : vector<2x128xf32>
    %137 = math.exp %136 : vector<2x128xf32>
    %cst_38 = arith.constant 1.000000e+00 : f32
    %138 = vector.broadcast %cst_38 : f32 to vector<2x128xf32>
    %139 = arith.addf %138, %137 : vector<2x128xf32>
    %140 = arith.divf %138, %139 : vector<2x128xf32>
    %141 = vector.extract_strided_slice %140 {offsets = [0, 0], sizes = [2, 32], strides = [1, 1]} : vector<2x128xf32> to vector<2x32xf32>
    %142 = vector.extract_strided_slice %140 {offsets = [0, 32], sizes = [2, 32], strides = [1, 1]} : vector<2x128xf32> to vector<2x32xf32>
    %143 = vector.extract_strided_slice %140 {offsets = [0, 96], sizes = [2, 32], strides = [1, 1]} : vector<2x128xf32> to vector<2x32xf32>
    %144 = vector.extract_strided_slice %130 {offsets = [0, 64], sizes = [2, 32], strides = [1, 1]} : vector<2x128xf32> to vector<2x32xf32>
    %145 = math.tanh %144 : vector<2x32xf32>
    %146 = arith.mulf %142, %96 : vector<2x32xf32>
    %147 = arith.mulf %141, %145 : vector<2x32xf32>
    %148 = arith.addf %146, %147 : vector<2x32xf32>
    %149 = math.tanh %148 : vector<2x32xf32>
    %150 = arith.mulf %143, %149 : vector<2x32xf32>
    %151 = arith.negf %135 : vector<2x128xf32>
    %152 = math.exp %151 : vector<2x128xf32>
    %cst_39 = arith.constant 1.000000e+00 : f32
    %153 = vector.broadcast %cst_39 : f32 to vector<2x128xf32>
    %154 = arith.addf %153, %152 : vector<2x128xf32>
    %155 = arith.divf %153, %154 : vector<2x128xf32>
    %156 = vector.extract_strided_slice %155 {offsets = [0, 0], sizes = [2, 32], strides = [1, 1]} : vector<2x128xf32> to vector<2x32xf32>
    %157 = vector.extract_strided_slice %155 {offsets = [0, 32], sizes = [2, 32], strides = [1, 1]} : vector<2x128xf32> to vector<2x32xf32>
    %158 = vector.extract_strided_slice %155 {offsets = [0, 96], sizes = [2, 32], strides = [1, 1]} : vector<2x128xf32> to vector<2x32xf32>
    %159 = vector.extract_strided_slice %135 {offsets = [0, 64], sizes = [2, 32], strides = [1, 1]} : vector<2x128xf32> to vector<2x32xf32>
    %160 = math.tanh %159 : vector<2x32xf32>
    %161 = arith.mulf %157, %111 : vector<2x32xf32>
    %162 = arith.mulf %156, %160 : vector<2x32xf32>
    %163 = arith.addf %161, %162 : vector<2x32xf32>
    %164 = math.tanh %163 : vector<2x32xf32>
    %165 = arith.mulf %158, %164 : vector<2x32xf32>
    %166 = arith.maximumf %114, %150 : vector<2x32xf32>
    %167 = arith.maximumf %115, %165 : vector<2x32xf32>
    %c3_i32 = arith.constant 3 : i32
    %168 = arith.index_cast %c3_i32 : i32 to index
    %c0_40 = arith.constant 0 : index
    %c0_41 = arith.constant 0 : index
    %169 = vector.load %arg2[%168, %c0_40, %c0_41] : memref<8x2x128xbf16, #tpu.memory_space<vmem>>, vector<1x2x128xbf16>
    %170 = vector.shape_cast %169 : vector<1x2x128xbf16> to vector<2x128xbf16>
    %c7_i32_42 = arith.constant 7 : i32
    %171 = arith.subi %c7_i32_42, %c3_i32 : i32
    %172 = arith.index_cast %171 : i32 to index
    %c0_43 = arith.constant 0 : index
    %c0_44 = arith.constant 0 : index
    %173 = vector.load %arg3[%172, %c0_43, %c0_44] : memref<8x2x128xbf16, #tpu.memory_space<vmem>>, vector<1x2x128xbf16>
    %174 = vector.shape_cast %173 : vector<1x2x128xbf16> to vector<2x128xbf16>
    %175 = tpu.concatenate %150, %165 in 1 : vector<2x32xf32>, vector<2x32xf32> -> vector<2x64xf32>
    %176 = arith.truncf %175 : vector<2x64xf32> to vector<2x64xbf16>
    %cst_45 = arith.constant dense<0.000000e+00> : vector<2x256xf32>
    %177 = tpu.matmul %176, %3, %cst_45 {dimension_numbers = #tpu.dot_dimension_numbers<[1], [0], [0], [1], [0, 0, 1, 1], [], []>} : vector<2x64xbf16>, vector<64x256xbf16>, vector<2x256xf32> -> vector<2x256xf32>
    %178 = arith.extf %170 : vector<2x128xbf16> to vector<2x128xf32>
    %179 = vector.extract_strided_slice %177 {offsets = [0, 0], sizes = [2, 128], strides = [1, 1]} : vector<2x256xf32> to vector<2x128xf32>
    %180 = arith.addf %178, %179 : vector<2x128xf32>
    %181 = vector.broadcast %4 : vector<1x128xf32> to vector<2x128xf32>
    %182 = arith.addf %180, %181 : vector<2x128xf32>
    %183 = arith.extf %174 : vector<2x128xbf16> to vector<2x128xf32>
    %184 = vector.extract_strided_slice %177 {offsets = [0, 128], sizes = [2, 128], strides = [1, 1]} : vector<2x256xf32> to vector<2x128xf32>
    %185 = arith.addf %183, %184 : vector<2x128xf32>
    %186 = vector.broadcast %5 : vector<1x128xf32> to vector<2x128xf32>
    %187 = arith.addf %185, %186 : vector<2x128xf32>
    %188 = arith.negf %182 : vector<2x128xf32>
    %189 = math.exp %188 : vector<2x128xf32>
    %cst_46 = arith.constant 1.000000e+00 : f32
    %190 = vector.broadcast %cst_46 : f32 to vector<2x128xf32>
    %191 = arith.addf %190, %189 : vector<2x128xf32>
    %192 = arith.divf %190, %191 : vector<2x128xf32>
    %193 = vector.extract_strided_slice %192 {offsets = [0, 0], sizes = [2, 32], strides = [1, 1]} : vector<2x128xf32> to vector<2x32xf32>
    %194 = vector.extract_strided_slice %192 {offsets = [0, 32], sizes = [2, 32], strides = [1, 1]} : vector<2x128xf32> to vector<2x32xf32>
    %195 = vector.extract_strided_slice %192 {offsets = [0, 96], sizes = [2, 32], strides = [1, 1]} : vector<2x128xf32> to vector<2x32xf32>
    %196 = vector.extract_strided_slice %182 {offsets = [0, 64], sizes = [2, 32], strides = [1, 1]} : vector<2x128xf32> to vector<2x32xf32>
    %197 = math.tanh %196 : vector<2x32xf32>
    %198 = arith.mulf %194, %148 : vector<2x32xf32>
    %199 = arith.mulf %193, %197 : vector<2x32xf32>
    %200 = arith.addf %198, %199 : vector<2x32xf32>
    %201 = math.tanh %200 : vector<2x32xf32>
    %202 = arith.mulf %195, %201 : vector<2x32xf32>
    %203 = arith.negf %187 : vector<2x128xf32>
    %204 = math.exp %203 : vector<2x128xf32>
    %cst_47 = arith.constant 1.000000e+00 : f32
    %205 = vector.broadcast %cst_47 : f32 to vector<2x128xf32>
    %206 = arith.addf %205, %204 : vector<2x128xf32>
    %207 = arith.divf %205, %206 : vector<2x128xf32>
    %208 = vector.extract_strided_slice %207 {offsets = [0, 0], sizes = [2, 32], strides = [1, 1]} : vector<2x128xf32> to vector<2x32xf32>
    %209 = vector.extract_strided_slice %207 {offsets = [0, 32], sizes = [2, 32], strides = [1, 1]} : vector<2x128xf32> to vector<2x32xf32>
    %210 = vector.extract_strided_slice %207 {offsets = [0, 96], sizes = [2, 32], strides = [1, 1]} : vector<2x128xf32> to vector<2x32xf32>
    %211 = vector.extract_strided_slice %187 {offsets = [0, 64], sizes = [2, 32], strides = [1, 1]} : vector<2x128xf32> to vector<2x32xf32>
    %212 = math.tanh %211 : vector<2x32xf32>
    %213 = arith.mulf %209, %163 : vector<2x32xf32>
    %214 = arith.mulf %208, %212 : vector<2x32xf32>
    %215 = arith.addf %213, %214 : vector<2x32xf32>
    %216 = math.tanh %215 : vector<2x32xf32>
    %217 = arith.mulf %210, %216 : vector<2x32xf32>
    %218 = arith.maximumf %166, %202 : vector<2x32xf32>
    %219 = arith.maximumf %167, %217 : vector<2x32xf32>
    %c4_i32 = arith.constant 4 : i32
    %220 = arith.index_cast %c4_i32 : i32 to index
    %c0_48 = arith.constant 0 : index
    %c0_49 = arith.constant 0 : index
    %221 = vector.load %arg2[%220, %c0_48, %c0_49] : memref<8x2x128xbf16, #tpu.memory_space<vmem>>, vector<1x2x128xbf16>
    %222 = vector.shape_cast %221 : vector<1x2x128xbf16> to vector<2x128xbf16>
    %c7_i32_50 = arith.constant 7 : i32
    %223 = arith.subi %c7_i32_50, %c4_i32 : i32
    %224 = arith.index_cast %223 : i32 to index
    %c0_51 = arith.constant 0 : index
    %c0_52 = arith.constant 0 : index
    %225 = vector.load %arg3[%224, %c0_51, %c0_52] : memref<8x2x128xbf16, #tpu.memory_space<vmem>>, vector<1x2x128xbf16>
    %226 = vector.shape_cast %225 : vector<1x2x128xbf16> to vector<2x128xbf16>
    %227 = tpu.concatenate %202, %217 in 1 : vector<2x32xf32>, vector<2x32xf32> -> vector<2x64xf32>
    %228 = arith.truncf %227 : vector<2x64xf32> to vector<2x64xbf16>
    %cst_53 = arith.constant dense<0.000000e+00> : vector<2x256xf32>
    %229 = tpu.matmul %228, %3, %cst_53 {dimension_numbers = #tpu.dot_dimension_numbers<[1], [0], [0], [1], [0, 0, 1, 1], [], []>} : vector<2x64xbf16>, vector<64x256xbf16>, vector<2x256xf32> -> vector<2x256xf32>
    %230 = arith.extf %222 : vector<2x128xbf16> to vector<2x128xf32>
    %231 = vector.extract_strided_slice %229 {offsets = [0, 0], sizes = [2, 128], strides = [1, 1]} : vector<2x256xf32> to vector<2x128xf32>
    %232 = arith.addf %230, %231 : vector<2x128xf32>
    %233 = vector.broadcast %4 : vector<1x128xf32> to vector<2x128xf32>
    %234 = arith.addf %232, %233 : vector<2x128xf32>
    %235 = arith.extf %226 : vector<2x128xbf16> to vector<2x128xf32>
    %236 = vector.extract_strided_slice %229 {offsets = [0, 128], sizes = [2, 128], strides = [1, 1]} : vector<2x256xf32> to vector<2x128xf32>
    %237 = arith.addf %235, %236 : vector<2x128xf32>
    %238 = vector.broadcast %5 : vector<1x128xf32> to vector<2x128xf32>
    %239 = arith.addf %237, %238 : vector<2x128xf32>
    %240 = arith.negf %234 : vector<2x128xf32>
    %241 = math.exp %240 : vector<2x128xf32>
    %cst_54 = arith.constant 1.000000e+00 : f32
    %242 = vector.broadcast %cst_54 : f32 to vector<2x128xf32>
    %243 = arith.addf %242, %241 : vector<2x128xf32>
    %244 = arith.divf %242, %243 : vector<2x128xf32>
    %245 = vector.extract_strided_slice %244 {offsets = [0, 0], sizes = [2, 32], strides = [1, 1]} : vector<2x128xf32> to vector<2x32xf32>
    %246 = vector.extract_strided_slice %244 {offsets = [0, 32], sizes = [2, 32], strides = [1, 1]} : vector<2x128xf32> to vector<2x32xf32>
    %247 = vector.extract_strided_slice %244 {offsets = [0, 96], sizes = [2, 32], strides = [1, 1]} : vector<2x128xf32> to vector<2x32xf32>
    %248 = vector.extract_strided_slice %234 {offsets = [0, 64], sizes = [2, 32], strides = [1, 1]} : vector<2x128xf32> to vector<2x32xf32>
    %249 = math.tanh %248 : vector<2x32xf32>
    %250 = arith.mulf %246, %200 : vector<2x32xf32>
    %251 = arith.mulf %245, %249 : vector<2x32xf32>
    %252 = arith.addf %250, %251 : vector<2x32xf32>
    %253 = math.tanh %252 : vector<2x32xf32>
    %254 = arith.mulf %247, %253 : vector<2x32xf32>
    %255 = arith.negf %239 : vector<2x128xf32>
    %256 = math.exp %255 : vector<2x128xf32>
    %cst_55 = arith.constant 1.000000e+00 : f32
    %257 = vector.broadcast %cst_55 : f32 to vector<2x128xf32>
    %258 = arith.addf %257, %256 : vector<2x128xf32>
    %259 = arith.divf %257, %258 : vector<2x128xf32>
    %260 = vector.extract_strided_slice %259 {offsets = [0, 0], sizes = [2, 32], strides = [1, 1]} : vector<2x128xf32> to vector<2x32xf32>
    %261 = vector.extract_strided_slice %259 {offsets = [0, 32], sizes = [2, 32], strides = [1, 1]} : vector<2x128xf32> to vector<2x32xf32>
    %262 = vector.extract_strided_slice %259 {offsets = [0, 96], sizes = [2, 32], strides = [1, 1]} : vector<2x128xf32> to vector<2x32xf32>
    %263 = vector.extract_strided_slice %239 {offsets = [0, 64], sizes = [2, 32], strides = [1, 1]} : vector<2x128xf32> to vector<2x32xf32>
    %264 = math.tanh %263 : vector<2x32xf32>
    %265 = arith.mulf %261, %215 : vector<2x32xf32>
    %266 = arith.mulf %260, %264 : vector<2x32xf32>
    %267 = arith.addf %265, %266 : vector<2x32xf32>
    %268 = math.tanh %267 : vector<2x32xf32>
    %269 = arith.mulf %262, %268 : vector<2x32xf32>
    %270 = arith.maximumf %218, %254 : vector<2x32xf32>
    %271 = arith.maximumf %219, %269 : vector<2x32xf32>
    %c5_i32 = arith.constant 5 : i32
    %272 = arith.index_cast %c5_i32 : i32 to index
    %c0_56 = arith.constant 0 : index
    %c0_57 = arith.constant 0 : index
    %273 = vector.load %arg2[%272, %c0_56, %c0_57] : memref<8x2x128xbf16, #tpu.memory_space<vmem>>, vector<1x2x128xbf16>
    %274 = vector.shape_cast %273 : vector<1x2x128xbf16> to vector<2x128xbf16>
    %c7_i32_58 = arith.constant 7 : i32
    %275 = arith.subi %c7_i32_58, %c5_i32 : i32
    %276 = arith.index_cast %275 : i32 to index
    %c0_59 = arith.constant 0 : index
    %c0_60 = arith.constant 0 : index
    %277 = vector.load %arg3[%276, %c0_59, %c0_60] : memref<8x2x128xbf16, #tpu.memory_space<vmem>>, vector<1x2x128xbf16>
    %278 = vector.shape_cast %277 : vector<1x2x128xbf16> to vector<2x128xbf16>
    %279 = tpu.concatenate %254, %269 in 1 : vector<2x32xf32>, vector<2x32xf32> -> vector<2x64xf32>
    %280 = arith.truncf %279 : vector<2x64xf32> to vector<2x64xbf16>
    %cst_61 = arith.constant dense<0.000000e+00> : vector<2x256xf32>
    %281 = tpu.matmul %280, %3, %cst_61 {dimension_numbers = #tpu.dot_dimension_numbers<[1], [0], [0], [1], [0, 0, 1, 1], [], []>} : vector<2x64xbf16>, vector<64x256xbf16>, vector<2x256xf32> -> vector<2x256xf32>
    %282 = arith.extf %274 : vector<2x128xbf16> to vector<2x128xf32>
    %283 = vector.extract_strided_slice %281 {offsets = [0, 0], sizes = [2, 128], strides = [1, 1]} : vector<2x256xf32> to vector<2x128xf32>
    %284 = arith.addf %282, %283 : vector<2x128xf32>
    %285 = vector.broadcast %4 : vector<1x128xf32> to vector<2x128xf32>
    %286 = arith.addf %284, %285 : vector<2x128xf32>
    %287 = arith.extf %278 : vector<2x128xbf16> to vector<2x128xf32>
    %288 = vector.extract_strided_slice %281 {offsets = [0, 128], sizes = [2, 128], strides = [1, 1]} : vector<2x256xf32> to vector<2x128xf32>
    %289 = arith.addf %287, %288 : vector<2x128xf32>
    %290 = vector.broadcast %5 : vector<1x128xf32> to vector<2x128xf32>
    %291 = arith.addf %289, %290 : vector<2x128xf32>
    %292 = arith.negf %286 : vector<2x128xf32>
    %293 = math.exp %292 : vector<2x128xf32>
    %cst_62 = arith.constant 1.000000e+00 : f32
    %294 = vector.broadcast %cst_62 : f32 to vector<2x128xf32>
    %295 = arith.addf %294, %293 : vector<2x128xf32>
    %296 = arith.divf %294, %295 : vector<2x128xf32>
    %297 = vector.extract_strided_slice %296 {offsets = [0, 0], sizes = [2, 32], strides = [1, 1]} : vector<2x128xf32> to vector<2x32xf32>
    %298 = vector.extract_strided_slice %296 {offsets = [0, 32], sizes = [2, 32], strides = [1, 1]} : vector<2x128xf32> to vector<2x32xf32>
    %299 = vector.extract_strided_slice %296 {offsets = [0, 96], sizes = [2, 32], strides = [1, 1]} : vector<2x128xf32> to vector<2x32xf32>
    %300 = vector.extract_strided_slice %286 {offsets = [0, 64], sizes = [2, 32], strides = [1, 1]} : vector<2x128xf32> to vector<2x32xf32>
    %301 = math.tanh %300 : vector<2x32xf32>
    %302 = arith.mulf %298, %252 : vector<2x32xf32>
    %303 = arith.mulf %297, %301 : vector<2x32xf32>
    %304 = arith.addf %302, %303 : vector<2x32xf32>
    %305 = math.tanh %304 : vector<2x32xf32>
    %306 = arith.mulf %299, %305 : vector<2x32xf32>
    %307 = arith.negf %291 : vector<2x128xf32>
    %308 = math.exp %307 : vector<2x128xf32>
    %cst_63 = arith.constant 1.000000e+00 : f32
    %309 = vector.broadcast %cst_63 : f32 to vector<2x128xf32>
    %310 = arith.addf %309, %308 : vector<2x128xf32>
    %311 = arith.divf %309, %310 : vector<2x128xf32>
    %312 = vector.extract_strided_slice %311 {offsets = [0, 0], sizes = [2, 32], strides = [1, 1]} : vector<2x128xf32> to vector<2x32xf32>
    %313 = vector.extract_strided_slice %311 {offsets = [0, 32], sizes = [2, 32], strides = [1, 1]} : vector<2x128xf32> to vector<2x32xf32>
    %314 = vector.extract_strided_slice %311 {offsets = [0, 96], sizes = [2, 32], strides = [1, 1]} : vector<2x128xf32> to vector<2x32xf32>
    %315 = vector.extract_strided_slice %291 {offsets = [0, 64], sizes = [2, 32], strides = [1, 1]} : vector<2x128xf32> to vector<2x32xf32>
    %316 = math.tanh %315 : vector<2x32xf32>
    %317 = arith.mulf %313, %267 : vector<2x32xf32>
    %318 = arith.mulf %312, %316 : vector<2x32xf32>
    %319 = arith.addf %317, %318 : vector<2x32xf32>
    %320 = math.tanh %319 : vector<2x32xf32>
    %321 = arith.mulf %314, %320 : vector<2x32xf32>
    %322 = arith.maximumf %270, %306 : vector<2x32xf32>
    %323 = arith.maximumf %271, %321 : vector<2x32xf32>
    %c6_i32 = arith.constant 6 : i32
    %324 = arith.index_cast %c6_i32 : i32 to index
    %c0_64 = arith.constant 0 : index
    %c0_65 = arith.constant 0 : index
    %325 = vector.load %arg2[%324, %c0_64, %c0_65] : memref<8x2x128xbf16, #tpu.memory_space<vmem>>, vector<1x2x128xbf16>
    %326 = vector.shape_cast %325 : vector<1x2x128xbf16> to vector<2x128xbf16>
    %c7_i32_66 = arith.constant 7 : i32
    %327 = arith.subi %c7_i32_66, %c6_i32 : i32
    %328 = arith.index_cast %327 : i32 to index
    %c0_67 = arith.constant 0 : index
    %c0_68 = arith.constant 0 : index
    %329 = vector.load %arg3[%328, %c0_67, %c0_68] : memref<8x2x128xbf16, #tpu.memory_space<vmem>>, vector<1x2x128xbf16>
    %330 = vector.shape_cast %329 : vector<1x2x128xbf16> to vector<2x128xbf16>
    %331 = tpu.concatenate %306, %321 in 1 : vector<2x32xf32>, vector<2x32xf32> -> vector<2x64xf32>
    %332 = arith.truncf %331 : vector<2x64xf32> to vector<2x64xbf16>
    %cst_69 = arith.constant dense<0.000000e+00> : vector<2x256xf32>
    %333 = tpu.matmul %332, %3, %cst_69 {dimension_numbers = #tpu.dot_dimension_numbers<[1], [0], [0], [1], [0, 0, 1, 1], [], []>} : vector<2x64xbf16>, vector<64x256xbf16>, vector<2x256xf32> -> vector<2x256xf32>
    %334 = arith.extf %326 : vector<2x128xbf16> to vector<2x128xf32>
    %335 = vector.extract_strided_slice %333 {offsets = [0, 0], sizes = [2, 128], strides = [1, 1]} : vector<2x256xf32> to vector<2x128xf32>
    %336 = arith.addf %334, %335 : vector<2x128xf32>
    %337 = vector.broadcast %4 : vector<1x128xf32> to vector<2x128xf32>
    %338 = arith.addf %336, %337 : vector<2x128xf32>
    %339 = arith.extf %330 : vector<2x128xbf16> to vector<2x128xf32>
    %340 = vector.extract_strided_slice %333 {offsets = [0, 128], sizes = [2, 128], strides = [1, 1]} : vector<2x256xf32> to vector<2x128xf32>
    %341 = arith.addf %339, %340 : vector<2x128xf32>
    %342 = vector.broadcast %5 : vector<1x128xf32> to vector<2x128xf32>
    %343 = arith.addf %341, %342 : vector<2x128xf32>
    %344 = arith.negf %338 : vector<2x128xf32>
    %345 = math.exp %344 : vector<2x128xf32>
    %cst_70 = arith.constant 1.000000e+00 : f32
    %346 = vector.broadcast %cst_70 : f32 to vector<2x128xf32>
    %347 = arith.addf %346, %345 : vector<2x128xf32>
    %348 = arith.divf %346, %347 : vector<2x128xf32>
    %349 = vector.extract_strided_slice %348 {offsets = [0, 0], sizes = [2, 32], strides = [1, 1]} : vector<2x128xf32> to vector<2x32xf32>
    %350 = vector.extract_strided_slice %348 {offsets = [0, 32], sizes = [2, 32], strides = [1, 1]} : vector<2x128xf32> to vector<2x32xf32>
    %351 = vector.extract_strided_slice %348 {offsets = [0, 96], sizes = [2, 32], strides = [1, 1]} : vector<2x128xf32> to vector<2x32xf32>
    %352 = vector.extract_strided_slice %338 {offsets = [0, 64], sizes = [2, 32], strides = [1, 1]} : vector<2x128xf32> to vector<2x32xf32>
    %353 = math.tanh %352 : vector<2x32xf32>
    %354 = arith.mulf %350, %304 : vector<2x32xf32>
    %355 = arith.mulf %349, %353 : vector<2x32xf32>
    %356 = arith.addf %354, %355 : vector<2x32xf32>
    %357 = math.tanh %356 : vector<2x32xf32>
    %358 = arith.mulf %351, %357 : vector<2x32xf32>
    %359 = arith.negf %343 : vector<2x128xf32>
    %360 = math.exp %359 : vector<2x128xf32>
    %cst_71 = arith.constant 1.000000e+00 : f32
    %361 = vector.broadcast %cst_71 : f32 to vector<2x128xf32>
    %362 = arith.addf %361, %360 : vector<2x128xf32>
    %363 = arith.divf %361, %362 : vector<2x128xf32>
    %364 = vector.extract_strided_slice %363 {offsets = [0, 0], sizes = [2, 32], strides = [1, 1]} : vector<2x128xf32> to vector<2x32xf32>
    %365 = vector.extract_strided_slice %363 {offsets = [0, 32], sizes = [2, 32], strides = [1, 1]} : vector<2x128xf32> to vector<2x32xf32>
    %366 = vector.extract_strided_slice %363 {offsets = [0, 96], sizes = [2, 32], strides = [1, 1]} : vector<2x128xf32> to vector<2x32xf32>
    %367 = vector.extract_strided_slice %343 {offsets = [0, 64], sizes = [2, 32], strides = [1, 1]} : vector<2x128xf32> to vector<2x32xf32>
    %368 = math.tanh %367 : vector<2x32xf32>
    %369 = arith.mulf %365, %319 : vector<2x32xf32>
    %370 = arith.mulf %364, %368 : vector<2x32xf32>
    %371 = arith.addf %369, %370 : vector<2x32xf32>
    %372 = math.tanh %371 : vector<2x32xf32>
    %373 = arith.mulf %366, %372 : vector<2x32xf32>
    %374 = arith.maximumf %322, %358 : vector<2x32xf32>
    %375 = arith.maximumf %323, %373 : vector<2x32xf32>
    %c7_i32_72 = arith.constant 7 : i32
    %376 = arith.index_cast %c7_i32_72 : i32 to index
    %c0_73 = arith.constant 0 : index
    %c0_74 = arith.constant 0 : index
    %377 = vector.load %arg2[%376, %c0_73, %c0_74] : memref<8x2x128xbf16, #tpu.memory_space<vmem>>, vector<1x2x128xbf16>
    %378 = vector.shape_cast %377 : vector<1x2x128xbf16> to vector<2x128xbf16>
    %c7_i32_75 = arith.constant 7 : i32
    %379 = arith.subi %c7_i32_75, %c7_i32_72 : i32
    %380 = arith.index_cast %379 : i32 to index
    %c0_76 = arith.constant 0 : index
    %c0_77 = arith.constant 0 : index
    %381 = vector.load %arg3[%380, %c0_76, %c0_77] : memref<8x2x128xbf16, #tpu.memory_space<vmem>>, vector<1x2x128xbf16>
    %382 = vector.shape_cast %381 : vector<1x2x128xbf16> to vector<2x128xbf16>
    %383 = tpu.concatenate %358, %373 in 1 : vector<2x32xf32>, vector<2x32xf32> -> vector<2x64xf32>
    %384 = arith.truncf %383 : vector<2x64xf32> to vector<2x64xbf16>
    %cst_78 = arith.constant dense<0.000000e+00> : vector<2x256xf32>
    %385 = tpu.matmul %384, %3, %cst_78 {dimension_numbers = #tpu.dot_dimension_numbers<[1], [0], [0], [1], [0, 0, 1, 1], [], []>} : vector<2x64xbf16>, vector<64x256xbf16>, vector<2x256xf32> -> vector<2x256xf32>
    %386 = arith.extf %378 : vector<2x128xbf16> to vector<2x128xf32>
    %387 = vector.extract_strided_slice %385 {offsets = [0, 0], sizes = [2, 128], strides = [1, 1]} : vector<2x256xf32> to vector<2x128xf32>
    %388 = arith.addf %386, %387 : vector<2x128xf32>
    %389 = vector.broadcast %4 : vector<1x128xf32> to vector<2x128xf32>
    %390 = arith.addf %388, %389 : vector<2x128xf32>
    %391 = arith.extf %382 : vector<2x128xbf16> to vector<2x128xf32>
    %392 = vector.extract_strided_slice %385 {offsets = [0, 128], sizes = [2, 128], strides = [1, 1]} : vector<2x256xf32> to vector<2x128xf32>
    %393 = arith.addf %391, %392 : vector<2x128xf32>
    %394 = vector.broadcast %5 : vector<1x128xf32> to vector<2x128xf32>
    %395 = arith.addf %393, %394 : vector<2x128xf32>
    %396 = arith.negf %390 : vector<2x128xf32>
    %397 = math.exp %396 : vector<2x128xf32>
    %cst_79 = arith.constant 1.000000e+00 : f32
    %398 = vector.broadcast %cst_79 : f32 to vector<2x128xf32>
    %399 = arith.addf %398, %397 : vector<2x128xf32>
    %400 = arith.divf %398, %399 : vector<2x128xf32>
    %401 = vector.extract_strided_slice %400 {offsets = [0, 0], sizes = [2, 32], strides = [1, 1]} : vector<2x128xf32> to vector<2x32xf32>
    %402 = vector.extract_strided_slice %400 {offsets = [0, 32], sizes = [2, 32], strides = [1, 1]} : vector<2x128xf32> to vector<2x32xf32>
    %403 = vector.extract_strided_slice %400 {offsets = [0, 96], sizes = [2, 32], strides = [1, 1]} : vector<2x128xf32> to vector<2x32xf32>
    %404 = vector.extract_strided_slice %390 {offsets = [0, 64], sizes = [2, 32], strides = [1, 1]} : vector<2x128xf32> to vector<2x32xf32>
    %405 = math.tanh %404 : vector<2x32xf32>
    %406 = arith.mulf %402, %356 : vector<2x32xf32>
    %407 = arith.mulf %401, %405 : vector<2x32xf32>
    %408 = arith.addf %406, %407 : vector<2x32xf32>
    %409 = math.tanh %408 : vector<2x32xf32>
    %410 = arith.mulf %403, %409 : vector<2x32xf32>
    %411 = arith.negf %395 : vector<2x128xf32>
    %412 = math.exp %411 : vector<2x128xf32>
    %cst_80 = arith.constant 1.000000e+00 : f32
    %413 = vector.broadcast %cst_80 : f32 to vector<2x128xf32>
    %414 = arith.addf %413, %412 : vector<2x128xf32>
    %415 = arith.divf %413, %414 : vector<2x128xf32>
    %416 = vector.extract_strided_slice %415 {offsets = [0, 0], sizes = [2, 32], strides = [1, 1]} : vector<2x128xf32> to vector<2x32xf32>
    %417 = vector.extract_strided_slice %415 {offsets = [0, 32], sizes = [2, 32], strides = [1, 1]} : vector<2x128xf32> to vector<2x32xf32>
    %418 = vector.extract_strided_slice %415 {offsets = [0, 96], sizes = [2, 32], strides = [1, 1]} : vector<2x128xf32> to vector<2x32xf32>
    %419 = vector.extract_strided_slice %395 {offsets = [0, 64], sizes = [2, 32], strides = [1, 1]} : vector<2x128xf32> to vector<2x32xf32>
    %420 = math.tanh %419 : vector<2x32xf32>
    %421 = arith.mulf %417, %371 : vector<2x32xf32>
    %422 = arith.mulf %416, %420 : vector<2x32xf32>
    %423 = arith.addf %421, %422 : vector<2x32xf32>
    %424 = math.tanh %423 : vector<2x32xf32>
    %425 = arith.mulf %418, %424 : vector<2x32xf32>
    %426 = arith.maximumf %374, %410 : vector<2x32xf32>
    %427 = arith.maximumf %375, %425 : vector<2x32xf32>
    %c8_i32 = arith.constant 8 : i32
    %c0_81 = arith.constant 0 : index
    %c0_82 = arith.constant 0 : index
    %428 = vector.load %arg7[%c0_81, %c0_82] : memref<2x32xf32, #tpu.memory_space<vmem>>, vector<2x32xf32>
    tpu.vector_store %arg7[%c0_81, %c0_82], %410 {strides = array<i32>} : memref<2x32xf32, #tpu.memory_space<vmem>>, vector<2x32xf32>,
    %c0_83 = arith.constant 0 : index
    %c0_84 = arith.constant 0 : index
    %429 = vector.load %arg8[%c0_83, %c0_84] : memref<2x32xf32, #tpu.memory_space<vmem>>, vector<2x32xf32>
    tpu.vector_store %arg8[%c0_83, %c0_84], %408 {strides = array<i32>} : memref<2x32xf32, #tpu.memory_space<vmem>>, vector<2x32xf32>,
    %c0_85 = arith.constant 0 : index
    %c0_86 = arith.constant 0 : index
    %430 = vector.load %arg9[%c0_85, %c0_86] : memref<2x32xf32, #tpu.memory_space<vmem>>, vector<2x32xf32>
    tpu.vector_store %arg9[%c0_85, %c0_86], %425 {strides = array<i32>} : memref<2x32xf32, #tpu.memory_space<vmem>>, vector<2x32xf32>,
    %c0_87 = arith.constant 0 : index
    %c0_88 = arith.constant 0 : index
    %431 = vector.load %arg10[%c0_87, %c0_88] : memref<2x32xf32, #tpu.memory_space<vmem>>, vector<2x32xf32>
    tpu.vector_store %arg10[%c0_87, %c0_88], %423 {strides = array<i32>} : memref<2x32xf32, #tpu.memory_space<vmem>>, vector<2x32xf32>,
    %c0_89 = arith.constant 0 : index
    %c0_90 = arith.constant 0 : index
    %432 = vector.load %arg11[%c0_89, %c0_90] : memref<2x32xf32, #tpu.memory_space<vmem>>, vector<2x32xf32>
    tpu.vector_store %arg11[%c0_89, %c0_90], %426 {strides = array<i32>} : memref<2x32xf32, #tpu.memory_space<vmem>>, vector<2x32xf32>,
    %c0_91 = arith.constant 0 : index
    %c0_92 = arith.constant 0 : index
    %433 = vector.load %arg12[%c0_91, %c0_92] : memref<2x32xf32, #tpu.memory_space<vmem>>, vector<2x32xf32>
    tpu.vector_store %arg12[%c0_91, %c0_92], %427 {strides = array<i32>} : memref<2x32xf32, #tpu.memory_space<vmem>>, vector<2x32xf32>,
    %c0_i32_93 = arith.constant 0 : i32
    %434 = arith.cmpi eq, %arg1, %c0_i32_93 : i32
    %435 = arith.extui %434 : i1 to i32
    %c0_i32_94 = arith.constant 0 : i32
    %436 = arith.cmpi ne, %435, %c0_i32_94 : i32
    scf.if %436 {
      %437 = math.tanh %426 : vector<2x32xf32>
      %c0_95 = arith.constant 0 : index
      %c0_96 = arith.constant 0 : index
      %438 = vector.load %arg6[%c0_95, %c0_96] : memref<2x64xf32, #tpu.memory_space<vmem>>, vector<2x32xf32>
      tpu.vector_store %arg6[%c0_95, %c0_96], %437 {strides = array<i32>} : memref<2x64xf32, #tpu.memory_space<vmem>>, vector<2x32xf32>,
      %439 = math.tanh %427 : vector<2x32xf32>
      %c0_97 = arith.constant 0 : index
      %c32 = arith.constant 32 : index
      %440 = vector.load %arg6[%c0_97, %c32] : memref<2x64xf32, #tpu.memory_space<vmem>>, vector<2x32xf32>
      tpu.vector_store %arg6[%c0_97, %c32], %439 {strides = array<i32>} : memref<2x64xf32, #tpu.memory_space<vmem>>, vector<2x32xf32>,
    } else {
    }
    return
  }
  func.func @transform_0(%arg0: i32, %arg1: i32) -> (i32, i32, i32) {
    %c0_i32 = arith.constant 0 : i32
    %c0_i32_0 = arith.constant 0 : i32
    return %arg1, %arg0, %c0_i32 : i32, i32, i32
  }
  func.func @transform_1(%arg0: i32, %arg1: i32) -> (i32, i32, i32) {
    %c0_i32 = arith.constant 0 : i32
    %0 = arith.subi %c0_i32, %arg1 : i32
    %c0_i32_0 = arith.constant 0 : i32
    %c0_i32_1 = arith.constant 0 : i32
    return %0, %arg0, %c0_i32_0 : i32, i32, i32
  }
  func.func @transform_2(%arg0: i32, %arg1: i32) -> (i32, i32) {
    %c0_i32 = arith.constant 0 : i32
    %c0_i32_0 = arith.constant 0 : i32
    %c0_i32_1 = arith.constant 0 : i32
    return %c0_i32, %c0_i32_0 : i32, i32
  }
  func.func @transform_3(%arg0: i32, %arg1: i32) -> (i32, i32) {
    %c0_i32 = arith.constant 0 : i32
    %c0_i32_0 = arith.constant 0 : i32
    %c0_i32_1 = arith.constant 0 : i32
    return %c0_i32, %c0_i32_0 : i32, i32
  }
  func.func @transform_4(%arg0: i32, %arg1: i32) -> (i32, i32) {
    %c0_i32 = arith.constant 0 : i32
    %c0_i32_0 = arith.constant 0 : i32
    return %arg0, %c0_i32 : i32, i32
  }
}

</mosaic_0001>

<bundles_post_ra>
// kernel: tpu_custom_call.1
= control target key start
LH: loop header
LB: loop body
LE: loop exit
PB: predicated region body
PF: predicated region fallthrough
CT: control target
= control target key end

     0   :  { %9 = vsyncpa [#allocation9], 0  ;;  %s1944_s0 = inlined_call_operand.hbm [shape: bf16[8,2,128], index: 0, kind: input, shape index: {}]   ;;  %s1945_s1 = inlined_call_operand.hbm [shape: bf16[8,2,128], index: 1, kind: input, shape index: {}]   ;;  %s1946_s2 = inlined_call_operand.vmem [shape: f32[1,256], index: 2, kind: input, shape index: {}]   ;;  %s1947_s3 = inlined_call_operand.hbm [shape: bf16[64,256], index: 3, kind: input, shape index: {}]   ;;  %s1948_s4 = inlined_call_operand.hbm [shape: f32[2,64], index: 4, kind: output, shape index: {}]  }
   0x1   :  { %10 = vsyncpa [#allocation12], 0 }
   0x2   :  { %11 = vsyncpa [#allocation10], 0  ;;  %s1556_s15 = smov [#allocation11]   ;;  %s1557_s17 = smov [#allocation8]  }
   0x3   :  { %s33_s16 = sshll.u32 %s1556_s15, 4  ;;  %s17_s18 = sshll.u32 %s1557_s17, 4  ;;  %s34_s16 = int_to_ptr.vmem [resolvable:$true] %s33_s16  ;;  %s18_s18 = int_to_ptr.vmem [resolvable:$true] %s17_s18 }
   0x4   :  { %s1478_s19 = scalar_lea.vmem %s34_s16, 128  ;;  %p1483_p1 = scmp.lt.s32.totalorder %s34_s16, %s34_s16 }
   0x5   :  { %p1479_p0 = scmp.ne.s32.totalorder %s34_s16, %s1478_s19  ;;  %p1484_p2 = scmp.lt.s32.totalorder %s1478_s19, %s1478_s19 }
   0x7   :  { %p1485_p3 = por %p1484_p2, %p1483_p1 }
   0x9   :  { %p1486_p4 = pnand %p1485_p3, %p1479_p0 }
   0xb   :  { %1489 = shalt.err (!%p1486_p4)
}
   0xc   :  { %s1558_s20 = smov 16   ;;  %s1559_s21 = smov 1  }
   0xd   :  { %39 = dma.hbm_to_vmem [thread:$0]  %s1945_s1, 128, %s34_s16, [#allocation12], %s1558_s20, %s1558_s20, %s1559_s21  }
   0xe   :  { %s1498_s24 = scalar_lea.vmem %s18_s18, 128  ;;  %p1503_p6 = scmp.lt.s32.totalorder %s18_s18, %s18_s18 }
   0xf   :  { %p1499_p5 = scmp.ne.s32.totalorder %s18_s18, %s1498_s24  ;;  %p1504_p7 = scmp.lt.s32.totalorder %s1498_s24, %s1498_s24 }
  0x11   :  { %p1505_p8 = por %p1504_p7, %p1503_p6 }
  0x13   :  { %p1506_p9 = pnand %p1505_p8, %p1499_p5 }
  0x15   :  { %1509 = shalt.err (!%p1506_p9)
}
  0x16   :  { %23 = dma.hbm_to_vmem [thread:$0]  %s1944_s0, 128, %s18_s18, [#allocation9], %s1558_s20, %s1558_s20, %s1559_s21  }
  0x17   :  { %s1560_s27 = smov [#allocation13]  }
  0x18   :  { %s47_s28 = sshll.u32 %s1560_s27, 4  ;;  %s48_s28 = int_to_ptr.vmem [resolvable:$true] %s47_s28 }
  0x19   :  { %s1518_s29 = scalar_lea.vmem %s48_s28, 1024  ;;  %p1523_p11 = scmp.lt.s32.totalorder %s48_s28, %s48_s28 }
  0x1a   :  { %p1519_p10 = scmp.ne.s32.totalorder %s48_s28, %s1518_s29  ;;  %p1524_p12 = scmp.lt.s32.totalorder %s1518_s29, %s1518_s29 }
  0x1c   :  { %p1525_p13 = por %p1524_p12, %p1523_p11 }
  0x1e   :  { %p1526_p0 = pnand %p1525_p13, %p1519_p10 }
  0x20   :  { %1529 = shalt.err (!%p1526_p0)
}
  0x21   :  { %s1561_s1 = smov 128   ;;  %s1562_s30 = smov 8  }
  0x22   :  { %53 = dma.hbm_to_vmem [thread:$0]  %s1947_s3, 1024, %s48_s28, [#allocation12], %s1561_s1, %s1561_s1, %s1562_s30  }
  0x23   :  { %1550 = dma.done.wait [#allocation9], 128  }
  0x24   :  { %1551 = vsyncadd [#allocation9], 4294967168 }
  0x25   :  { %1552 = dma.done.wait [#allocation12], 1152  }
  0x26   :  { %1553 = vsyncadd [#allocation12], 4294966144  ;;  %vm70_vm0 = vcmask 254976   ;;  %v1563_v0 = vmov 0.0   ;;  %v1564_v1 = vmov 0   ;;  %s1565_s0 = smov 32   ;;  %v280_v58 = vlaneseq }
  0x27   :  { %73 = vst.msk [vmem:[#allocation4] sm:$0x3] %vm70_vm0, %v1563_v0  ;;  %71 = vst.msk [vmem:[#allocation2] sm:$0x3] %vm70_vm0, %v1563_v0  ;;  %179 = vmatprep.mubr.bf16.mxu0 %v1564_v1  ;;  %344 = vmatprep.mubr.bf16.mxu1 %v1564_v1  ;;  %v1611_v2 = vld [vmem:[#allocation13 + $0x34] ss:$8 sps:$4 sm:$0xff]  }
  0x28   :  { %72 = vst.msk [vmem:[#allocation3] sm:$0x3] %vm70_vm0, %v1563_v0  ;;  %74 = vst.msk [vmem:[#allocation5] sm:$0x3] %vm70_vm0, %v1563_v0  ;;  %v1613_v4 = vld [vmem:[#allocation13 + $0x30] ss:$8 sps:$4 sm:$0xff]   ;;  %155 = vmatprep.subr.bf16.mxu0 %v1611_v2  ;;  %320 = vmatprep.subr.bf16.mxu1 %v1611_v2 }
  0x29   :  { %v1617_v5 = vld [vmem:[#allocation13 + $0x24] ss:$8 sps:$4 sm:$0xff]   ;;  %156 = vmatpush1.bf16.msra.mxu0 %v1613_v4  ;;  %v1620_v6 = vld [vmem:[#allocation13 + $0x20] ss:$8 sps:$4 sm:$0xff]   ;;  %v1624_v7 = vld [vmem:[#allocation13 + $0x14] ss:$8 sps:$4 sm:$0xff]   ;;  %321 = vmatpush1.bf16.msra.mxu1 %v1613_v4 }
  0x2a   :  { %157 = vmatprep.subr.bf16.mxu0 %v1617_v5  ;;  %322 = vmatprep.subr.bf16.mxu1 %v1617_v5  ;;  %v1629_v8 = vld [vmem:[#allocation13 + $0x10] ss:$8 sps:$4 sm:$0xff]   ;;  %v1632_v9 = vld [vmem:[#allocation13 + $0x4] ss:$8 sps:$4 sm:$0xff]   ;;  %v1637_v10 = vld [vmem:[#allocation13] ss:$8 sps:$4 sm:$0xff]  }
  0x2b   :  { %vm100_vm1 = vcmask 261120   ;;  %vm143_vm2 = vcmask 523264   ;;  %v93_v15 = vld [vmem:[#allocation8] sm:$0x1]  ;;  %v95_v16 = vld [vmem:[#allocation11 + $0x7] sm:$0x1] }
  0x2c   :  { %v188_v17 = vunpack.c.l.bf16 %v93_v15  ;;  %v197_v18 = vunpack.c.l.bf16 %v95_v16  ;;  %v1660_v19 = vld [vmem:[%s1946_s2] ss:$0 sm:$0xff]  ;;  %v1665_v22 = vld [vmem:[%s1946_s2 + $0x1] ss:$0 sm:$0xff]  ;;  %s1566_s10 = smov 64   ;;  %v1567_v53 = vmov -1.0  }
  0x2d   :  { %158 = vmatpush1.bf16.msra.mxu0 %v1620_v6  ;;  %323 = vmatpush1.bf16.msra.mxu1 %v1620_v6  ;;  %75 = vst.msk [vmem:[#allocation6] sm:$0x3] %vm70_vm0, %v1567_v53  ;;  %76 = vst.msk [vmem:[#allocation7] sm:$0x3] %vm70_vm0, %v1567_v53  ;;  %v1568_v56 = vmov 1983009808  }
  0x2e   :  { %v89_v3 = vld [vmem:[#allocation4] sm:$0x3]  ;;  %159 = vmatprep.subr.bf16.mxu0 %v1624_v7  ;;  %324 = vmatprep.subr.bf16.mxu1 %v1624_v7  ;;  %v87_v11 = vld [vmem:[#allocation2] sm:$0x3]  ;;  %v278_v57 = vunpack.c.l.s4 %v1568_v56  ;;  %v281_v60 = vshrl.u32 %v280_v58, 7  ;;  %s1569_s2 = smov 96  }
  0x2f   :  { %97 = vrot.lane.b32.xlu0 %v89_v3, %s1565_s0  ;;  %v1289_v30 = vld.sshfl [vmem:[#allocation5] sm:$0x3 pattern:$0x76325410]  ;;  %s1570_s11 = smov [#allocation14]   ;;  %vm1255_vm3 = vcmask 517376  }
  0x30   :  { %v1287_v32 = vld.sshfl [vmem:[#allocation3] sm:$0x3 pattern:$0x76325410]  ;;  %v279_v59 = vunpack.c.0.s8 %v278_v57  ;;  %s1263_s12 = sshll.u32 %s1570_s11, 4  ;;  %s1264_s12 = int_to_ptr.vmem [resolvable:$true] %s1263_s12 }
  0x31   :  { %160 = vmatpush1.bf16.msra.mxu0 %v1629_v8  ;;  %325 = vmatpush1.bf16.msra.mxu1 %v1629_v8  ;;  %s1530_s13 = scalar_lea.vmem %s1264_s12, 32  ;;  %p1535_p2 = scmp.lt.s32.totalorder %s1264_s12, %s1264_s12 }
  0x32   :  { %161 = vmatprep.subr.bf16.mxu0 %v1632_v9  ;;  %326 = vmatprep.subr.bf16.mxu1 %v1632_v9  ;;  %v1685_v61 = vsub.s32 %v279_v59, %v281_v60  ;;  %p1531_p1 = scmp.ne.s32.totalorder %s1264_s12, %s1530_s13  ;;  %p1536_p3 = scmp.lt.s32.totalorder %s1530_s13, %s1530_s13 }
  0x34   :  { %p1537_p4 = por %p1536_p3, %p1535_p2 }
  0x35   :  { %162 = vmatpush1.bf16.msra.mxu0 %v1637_v10  ;;  %327 = vmatpush1.bf16.msra.mxu1 %v1637_v10 }
  0x36   :  { %451 = vmatprep.subr.bf16.mxu0 %v1611_v2  ;;  %582 = vmatprep.subr.bf16.mxu1 %v1611_v2  ;;  %p1538_p5 = pnand %p1537_p4, %p1531_p1 }
  0xa1   :  { %v98_v12 = vpop.permute.xlu0 %97 }
  0xa2   :  { %v101_v13 = vsel %vm100_vm1, %v87_v11, %v98_v12 }
  0xa3   :  { %v102_v14 = vpack.c.bf16 %v101_v13, %v101_v13 }
  0xa5   :  { %1283 = vmatmul.mubr.msk.bf16.vlgmr.msra.gmra.mxu0 %vm143_vm2, %v102_v14 }
  0xa6   :  { %452 = vmatpush1.bf16.msra.mxu0 %v1613_v4  ;;  %475 = vmatprep.mubr.bf16.mxu0 %v1564_v1 }
  0xa7   :  { %453 = vmatprep.subr.bf16.mxu0 %v1617_v5 }
  0xaa   :  { %454 = vmatpush1.bf16.msra.mxu0 %v1620_v6 }
  0xab   :  { %455 = vmatprep.subr.bf16.mxu0 %v1624_v7 }
  0xae   :  { %456 = vmatpush1.bf16.msra.mxu0 %v1629_v8 }
  0xaf   :  { %457 = vmatprep.subr.bf16.mxu0 %v1632_v9 }
  0xb2   :  { %458 = vmatpush1.bf16.msra.mxu0 %v1637_v10 }
  0xb3   :  { %713 = vmatprep.subr.bf16.mxu0 %v1611_v2 }
 0x165   :  { %v181_v20 = vpop.f32.mrf.mxu0 }
 0x166   :  { %v189_v21 = vadd.f32 %v188_v17, %v181_v20  ;;  %v301_v17 = vld [vmem:[#allocation8 + $0x1] sm:$0x1] }
 0x167   :  { %v183_v23 = vpop.f32.mrf.mxu0  ;;  %v353_v20 = vunpack.c.l.bf16 %v301_v17 }
 0x168   :  { %v196_v24 = vadd.f32 %v1660_v19, %v189_v21  ;;  %v198_v25 = vadd.f32 %v197_v18, %v183_v23  ;;  %v303_v18 = vld [vmem:[#allocation11 + $0x6] sm:$0x1] }
 0x169   :  { %v185_v26 = vpop.f32.mrf.mxu0  ;;  %v356_v21 = vunpack.c.l.bf16 %v303_v18 }
 0x16a   :  { %1338 = vtanh.f32 %v196_v24  ;;  %v205_v27 = vadd.f32 %v1665_v22, %v198_v25  ;;  %v1286_v33 = vmul.f32 -1.442695, %v196_v24 }
 0x16b   :  { %v186_v28 = vpop.f32.mrf.mxu0 }
 0x16c   :  { %1340 = vtanh.f32 %v205_v27  ;;  %v1288_v34 = vmul.f32 -1.442695, %v205_v27 }
 0x16d   :  { %1342 = vpow2.f32 %v1286_v33 }
 0x16e   :  { %1344 = vpow2.f32 %v1288_v34 }
 0x177   :  { %v1339_v29 = vpop.eup %1338 }
 0x178   :  { %226 = vrot.lane.b32.xlu0 %v1339_v29, %s1566_s10 }
 0x179   :  { %v1341_v31 = vpop.eup %1340 }
 0x17a   :  { %261 = vrot.lane.b32.xlu1 %v1341_v31, %s1566_s10  ;;  %v1343_v35 = vpop.eup %1342 }
 0x17b   :  { %v1345_v36 = vpop.eup %1344  ;;  %v209_v37 = vadd.f32 1.0, %v1343_v35 }
 0x17c   :  { %256 = vrot.lane.b32.xlu0 %v1289_v30, %s1565_s0  ;;  %v244_v38 = vadd.f32 1.0, %v1345_v36 }
 0x17d   :  { %1346 = vrcp.f32 %v209_v37 }
 0x17e   :  { %221 = vrot.lane.b32.xlu1 %v1287_v32, %s1565_s0  ;;  %1348 = vrcp.f32 %v244_v38 }
 0x18a   :  { %v1347_v39 = vpop.eup %1346 }
 0x18b   :  { %v1349_v42 = vpop.eup %1348 }
 0x1ea   :  { %v227_v40 = vpop.permute.xlu0 %226 }
 0x1eb   :  { %v229_v41 = vmul.f32 %v1347_v39, %v227_v40 }
 0x1ec   :  { %v262_v43 = vpop.permute.xlu1 %261 }
 0x1ed   :  { %231 = vrot.lane.b32.xlu1 %v229_v41, %s1565_s0  ;;  %v264_v44 = vmul.f32 %v1349_v42, %v262_v43 }
 0x1ee   :  { %v257_v46 = vpop.permute.xlu0 %256 }
 0x1ef   :  { %266 = vrot.lane.b32.xlu0 %v264_v44, %s1565_s0  ;;  %v259_v50 = vmul.f32 %v1349_v42, %v257_v46 }
 0x1f0   :  { %v222_v45 = vpop.permute.xlu1 %221 }
 0x1f1   :  { %v224_v47 = vmul.f32 %v1347_v39, %v222_v45 }
 0x25f   :  { %v232_v48 = vpop.permute.xlu1 %231 }
 0x260   :  { %v1675_v49 = vadd.f32 %v232_v48, %v224_v47 }
 0x261   :  { %v267_v51 = vpop.permute.xlu0 %266 }
 0x262   :  { %1350 = vtanh.f32 %v1675_v49  ;;  %v1678_v52 = vadd.f32 %v267_v51, %v259_v50 }
 0x264   :  { %1352 = vtanh.f32 %v1678_v52 }
 0x26f   :  { %v1351_v54 = vpop.eup %1350 }
 0x270   :  { %237 = vrot.lane.b32.xlu1 %v1351_v54, %s1566_s10 }
 0x271   :  { %v1353_v55 = vpop.eup %1352 }
 0x272   :  { %272 = vrot.lane.b32.xlu0 %v1353_v55, %s1566_s10 }
 0x2e2   :  { %v238_v62 = vpop.permute.xlu1 %237 }
 0x2e3   :  { %v240_v63 = vmul.f32 %v1347_v39, %v238_v62 }
 0x2e4   :  { %v273_v3 = vpop.permute.xlu0 %272 }
 0x2e5   :  { %v283_v0 = vrot.slane %v240_v63, %v1685_v61  ;;  %v275_v11 = vmul.f32 %v1349_v42, %v273_v3  ;;  %v434_v3 = vld [vmem:[#allocation11 + $0x5] sm:$0x1] }
 0x2e7   :  { %284 = vrot.lane.b32.xlu1 %v283_v0, %s1565_s0  ;;  %v1690_v12 = vrot.slane %v275_v11, %v1685_v61  ;;  %v432_v0 = vld [vmem:[#allocation8 + $0x2] sm:$0x1] }
 0x2e8   :  { %v484_v11 = vunpack.c.l.bf16 %v432_v0 }
 0x2e9   :  { %304 = vrot.lane.b32.xlu0 %v1690_v12, %s1566_s10 }
 0x359   :  { %v1694_v13 = vpop.permute.xlu1 %284 }
 0x35b   :  { %v305_v14 = vpop.permute.xlu0 %304 }
 0x35c   :  { %v307_v15 = vsel %vm100_vm1, %v1694_v13, %v305_v14  ;;  %v487_v14 = vunpack.c.l.bf16 %v434_v3 }
 0x35d   :  { %v308_v16 = vpack.c.bf16 %v307_v15, %v307_v15 }
 0x35f   :  { %1290 = vmatmul.mubr.msk.bf16.vlgmr.msra.gmra.mxu1 %vm143_vm2, %v308_v16 }
 0x360   :  { %583 = vmatpush1.bf16.msra.mxu1 %v1613_v4  ;;  %606 = vmatprep.mubr.bf16.mxu1 %v1564_v1 }
 0x361   :  { %584 = vmatprep.subr.bf16.mxu1 %v1617_v5 }
 0x364   :  { %585 = vmatpush1.bf16.msra.mxu1 %v1620_v6 }
 0x365   :  { %586 = vmatprep.subr.bf16.mxu1 %v1624_v7 }
 0x368   :  { %587 = vmatpush1.bf16.msra.mxu1 %v1629_v8 }
 0x369   :  { %588 = vmatprep.subr.bf16.mxu1 %v1632_v9 }
 0x36c   :  { %589 = vmatpush1.bf16.msra.mxu1 %v1637_v10 }
 0x36d   :  { %844 = vmatprep.subr.bf16.mxu1 %v1611_v2 }
 0x41f   :  { %v346_v23 = vpop.f32.mrf.mxu1 }
 0x420   :  { %v354_v24 = vadd.f32 %v353_v20, %v346_v23 }
 0x421   :  { %v348_v25 = vpop.f32.mrf.mxu1 }
 0x422   :  { %v355_v26 = vadd.f32 %v1660_v19, %v354_v24  ;;  %v357_v27 = vadd.f32 %v356_v21, %v348_v25 }
 0x423   :  { %v350_v28 = vpop.f32.mrf.mxu1 }
 0x424   :  { %1354 = vtanh.f32 %v355_v26  ;;  %v358_v29 = vadd.f32 %v1665_v22, %v357_v27  ;;  %v1291_v33 = vmul.f32 -1.442695, %v355_v26 }
 0x425   :  { %v351_v30 = vpop.f32.mrf.mxu1 }
 0x426   :  { %1356 = vtanh.f32 %v358_v29  ;;  %v1292_v34 = vmul.f32 -1.442695, %v358_v29 }
 0x427   :  { %1358 = vpow2.f32 %v1291_v33 }
 0x428   :  { %1360 = vpow2.f32 %v1292_v34 }
 0x431   :  { %v1355_v31 = vpop.eup %1354 }
 0x432   :  { %368 = vrot.lane.b32.xlu1 %v1355_v31, %s1566_s10 }
 0x433   :  { %v1357_v32 = vpop.eup %1356 }
 0x434   :  { %392 = vrot.lane.b32.xlu0 %v1357_v32, %s1566_s10  ;;  %v1359_v35 = vpop.eup %1358 }
 0x435   :  { %v1361_v36 = vpop.eup %1360  ;;  %v362_v37 = vadd.f32 1.0, %v1359_v35 }
 0x436   :  { %v386_v38 = vadd.f32 1.0, %v1361_v36 }
 0x437   :  { %1362 = vrcp.f32 %v362_v37 }
 0x438   :  { %1364 = vrcp.f32 %v386_v38 }
 0x444   :  { %v1363_v39 = vpop.eup %1362 }
 0x445   :  { %v1365_v42 = vpop.eup %1364  ;;  %v366_v45 = vmul.f32 %v1363_v39, %v1675_v49 }
 0x446   :  { %v390_v48 = vmul.f32 %v1365_v42, %v1678_v52 }
 0x4a4   :  { %v369_v40 = vpop.permute.xlu1 %368 }
 0x4a5   :  { %v371_v41 = vmul.f32 %v1363_v39, %v369_v40 }
 0x4a6   :  { %v393_v43 = vpop.permute.xlu0 %392 }
 0x4a7   :  { %373 = vrot.lane.b32.xlu1 %v371_v41, %s1565_s0  ;;  %v395_v44 = vmul.f32 %v1365_v42, %v393_v43 }
 0x4a9   :  { %397 = vrot.lane.b32.xlu0 %v395_v44, %s1565_s0 }
 0x519   :  { %v374_v46 = vpop.permute.xlu1 %373 }
 0x51a   :  { %v1715_v47 = vadd.f32 %v374_v46, %v366_v45 }
 0x51b   :  { %v398_v50 = vpop.permute.xlu0 %397 }
 0x51c   :  { %1366 = vtanh.f32 %v1715_v47  ;;  %v1719_v51 = vadd.f32 %v398_v50, %v390_v48 }
 0x51e   :  { %1368 = vtanh.f32 %v1719_v51 }
 0x529   :  { %v1367_v53 = vpop.eup %1366 }
 0x52a   :  { %379 = vrot.lane.b32.xlu1 %v1367_v53, %s1566_s10 }
 0x52b   :  { %v1369_v54 = vpop.eup %1368 }
 0x52c   :  { %403 = vrot.lane.b32.xlu0 %v1369_v54, %s1566_s10 }
 0x59c   :  { %v380_v55 = vpop.permute.xlu1 %379 }
 0x59d   :  { %v382_v49 = vmul.f32 %v1363_v39, %v380_v55 }
 0x59e   :  { %v404_v57 = vpop.permute.xlu0 %403 }
 0x59f   :  { %v414_v56 = vrot.slane %v382_v49, %v1685_v61  ;;  %v406_v58 = vmul.f32 %v1365_v42, %v404_v57 }
 0x5a1   :  { %415 = vrot.lane.b32.xlu1 %v414_v56, %s1565_s0  ;;  %v1727_v52 = vrot.slane %v406_v58, %v1685_v61  ;;  %v563_v58 = vld [vmem:[#allocation8 + $0x3] sm:$0x1] }
 0x5a3   :  { %435 = vrot.lane.b32.xlu0 %v1727_v52, %s1566_s10 }
 0x613   :  { %v1731_v59 = vpop.permute.xlu1 %415 }
 0x615   :  { %v436_v60 = vpop.permute.xlu0 %435 }
 0x616   :  { %v438_v62 = vsel %vm100_vm1, %v1731_v59, %v436_v60  ;;  %v565_v60 = vld [vmem:[#allocation11 + $0x4] sm:$0x1] }
 0x617   :  { %v439_v63 = vpack.c.bf16 %v438_v62, %v438_v62  ;;  %v615_v62 = vunpack.c.l.bf16 %v563_v58 }
 0x619   :  { %1293 = vmatmul.mubr.msk.bf16.vlgmr.msra.gmra.mxu0 %vm143_vm2, %v439_v63  ;;  %v618_v63 = vunpack.c.l.bf16 %v565_v60 }
 0x61a   :  { %714 = vmatpush1.bf16.msra.mxu0 %v1613_v4  ;;  %737 = vmatprep.mubr.bf16.mxu0 %v1564_v1 }
 0x61b   :  { %715 = vmatprep.subr.bf16.mxu0 %v1617_v5 }
 0x61e   :  { %716 = vmatpush1.bf16.msra.mxu0 %v1620_v6 }
 0x61f   :  { %717 = vmatprep.subr.bf16.mxu0 %v1624_v7 }
 0x622   :  { %718 = vmatpush1.bf16.msra.mxu0 %v1629_v8 }
 0x623   :  { %719 = vmatprep.subr.bf16.mxu0 %v1632_v9 }
 0x626   :  { %720 = vmatpush1.bf16.msra.mxu0 %v1637_v10 }
 0x627   :  { %975 = vmatprep.subr.bf16.mxu0 %v1611_v2 }
 0x6d9   :  { %v477_v15 = vpop.f32.mrf.mxu0 }
 0x6da   :  { %v485_v16 = vadd.f32 %v484_v11, %v477_v15 }
 0x6db   :  { %v479_v17 = vpop.f32.mrf.mxu0 }
 0x6dc   :  { %v486_v18 = vadd.f32 %v1660_v19, %v485_v16  ;;  %v488_v20 = vadd.f32 %v487_v14, %v479_v17 }
 0x6dd   :  { %v481_v21 = vpop.f32.mrf.mxu0 }
 0x6de   :  { %1370 = vtanh.f32 %v486_v18  ;;  %v489_v23 = vadd.f32 %v1665_v22, %v488_v20  ;;  %v1294_v27 = vmul.f32 -1.442695, %v486_v18 }
 0x6df   :  { %v482_v24 = vpop.f32.mrf.mxu0 }
 0x6e0   :  { %1372 = vtanh.f32 %v489_v23  ;;  %v1295_v28 = vmul.f32 -1.442695, %v489_v23 }
 0x6e1   :  { %1374 = vpow2.f32 %v1294_v27 }
 0x6e2   :  { %1376 = vpow2.f32 %v1295_v28 }
 0x6eb   :  { %v1371_v25 = vpop.eup %1370 }
 0x6ec   :  { %499 = vrot.lane.b32.xlu1 %v1371_v25, %s1566_s10 }
 0x6ed   :  { %v1373_v26 = vpop.eup %1372 }
 0x6ee   :  { %523 = vrot.lane.b32.xlu0 %v1373_v26, %s1566_s10  ;;  %v1375_v29 = vpop.eup %1374 }
 0x6ef   :  { %v1377_v30 = vpop.eup %1376  ;;  %v493_v31 = vadd.f32 1.0, %v1375_v29 }
 0x6f0   :  { %v517_v32 = vadd.f32 1.0, %v1377_v30 }
 0x6f1   :  { %1378 = vrcp.f32 %v493_v31 }
 0x6f2   :  { %1380 = vrcp.f32 %v517_v32 }
 0x6fe   :  { %v1379_v33 = vpop.eup %1378 }
 0x6ff   :  { %v1381_v36 = vpop.eup %1380  ;;  %v497_v39 = vmul.f32 %v1379_v33, %v1715_v47 }
 0x700   :  { %v521_v42 = vmul.f32 %v1381_v36, %v1719_v51 }
 0x75e   :  { %v500_v34 = vpop.permute.xlu1 %499 }
 0x75f   :  { %v502_v35 = vmul.f32 %v1379_v33, %v500_v34 }
 0x760   :  { %v524_v37 = vpop.permute.xlu0 %523 }
 0x761   :  { %504 = vrot.lane.b32.xlu1 %v502_v35, %s1565_s0  ;;  %v526_v38 = vmul.f32 %v1381_v36, %v524_v37 }
 0x763   :  { %528 = vrot.lane.b32.xlu0 %v526_v38, %s1565_s0 }
 0x7d3   :  { %v505_v40 = vpop.permute.xlu1 %504 }
 0x7d4   :  { %v1752_v41 = vadd.f32 %v505_v40, %v497_v39 }
 0x7d5   :  { %v529_v43 = vpop.permute.xlu0 %528 }
 0x7d6   :  { %1382 = vtanh.f32 %v1752_v41  ;;  %v1756_v44 = vadd.f32 %v529_v43, %v521_v42 }
 0x7d8   :  { %1384 = vtanh.f32 %v1756_v44 }
 0x7e3   :  { %v1383_v45 = vpop.eup %1382 }
 0x7e4   :  { %510 = vrot.lane.b32.xlu1 %v1383_v45, %s1566_s10 }
 0x7e5   :  { %v1385_v46 = vpop.eup %1384 }
 0x7e6   :  { %534 = vrot.lane.b32.xlu0 %v1385_v46, %s1566_s10 }
 0x856   :  { %v511_v48 = vpop.permute.xlu1 %510 }
 0x857   :  { %v513_v47 = vmul.f32 %v1379_v33, %v511_v48 }
 0x858   :  { %v535_v53 = vpop.permute.xlu0 %534 }
 0x859   :  { %v545_v50 = vrot.slane %v513_v47, %v1685_v61  ;;  %v537_v54 = vmul.f32 %v1381_v36, %v535_v53 }
 0x85b   :  { %546 = vrot.lane.b32.xlu1 %v545_v50, %s1565_s0  ;;  %v1764_v51 = vrot.slane %v537_v54, %v1685_v61 }
 0x85d   :  { %566 = vrot.lane.b32.xlu0 %v1764_v51, %s1566_s10 }
 0x8cd   :  { %v1768_v55 = vpop.permute.xlu1 %546 }
 0x8cf   :  { %v567_v49 = vpop.permute.xlu0 %566 }
 0x8d0   :  { %v569_v56 = vsel %vm100_vm1, %v1768_v55, %v567_v49  ;;  %v694_v49 = vld [vmem:[#allocation8 + $0x4] sm:$0x1] }
 0x8d1   :  { %v570_v57 = vpack.c.bf16 %v569_v56, %v569_v56  ;;  %v696_v56 = vld [vmem:[#allocation11 + $0x3] sm:$0x1] }
 0x8d2   :  { %v749_v58 = vunpack.c.l.bf16 %v696_v56 }
 0x8d3   :  { %1296 = vmatmul.mubr.msk.bf16.vlgmr.msra.gmra.mxu1 %vm143_vm2, %v570_v57  ;;  %v746_v57 = vunpack.c.l.bf16 %v694_v49  ;;  %v827_v49 = vld [vmem:[#allocation11 + $0x2] sm:$0x1] }
 0x8d4   :  { %845 = vmatpush1.bf16.msra.mxu1 %v1613_v4  ;;  %868 = vmatprep.mubr.bf16.mxu1 %v1564_v1 }
 0x8d5   :  { %846 = vmatprep.subr.bf16.mxu1 %v1617_v5 }
 0x8d8   :  { %847 = vmatpush1.bf16.msra.mxu1 %v1620_v6 }
 0x8d9   :  { %848 = vmatprep.subr.bf16.mxu1 %v1624_v7 }
 0x8dc   :  { %849 = vmatpush1.bf16.msra.mxu1 %v1629_v8 }
 0x8dd   :  { %850 = vmatprep.subr.bf16.mxu1 %v1632_v9 }
 0x8e0   :  { %851 = vmatpush1.bf16.msra.mxu1 %v1637_v10 }
 0x8e1   :  { %1105 = vmatprep.subr.bf16.mxu1 %v1611_v2 }
 0x993   :  { %v608_v0 = vpop.f32.mrf.mxu1 }
 0x994   :  { %v616_v3 = vadd.f32 %v615_v62, %v608_v0 }
 0x995   :  { %v610_v11 = vpop.f32.mrf.mxu1 }
 0x996   :  { %v617_v14 = vadd.f32 %v1660_v19, %v616_v3  ;;  %v619_v15 = vadd.f32 %v618_v63, %v610_v11 }
 0x997   :  { %v612_v16 = vpop.f32.mrf.mxu1 }
 0x998   :  { %1386 = vtanh.f32 %v617_v14  ;;  %v620_v17 = vadd.f32 %v1665_v22, %v619_v15  ;;  %v1297_v21 = vmul.f32 -1.442695, %v617_v14 }
 0x999   :  { %v613_v18 = vpop.f32.mrf.mxu1 }
 0x99a   :  { %1388 = vtanh.f32 %v620_v17  ;;  %v1298_v23 = vmul.f32 -1.442695, %v620_v17 }
 0x99b   :  { %1390 = vpow2.f32 %v1297_v21 }
 0x99c   :  { %1392 = vpow2.f32 %v1298_v23 }
 0x9a5   :  { %v1387_v20 = vpop.eup %1386 }
 0x9a6   :  { %630 = vrot.lane.b32.xlu1 %v1387_v20, %s1566_s10 }
 0x9a7   :  { %v1389_v2 = vpop.eup %1388 }
 0x9a8   :  { %654 = vrot.lane.b32.xlu0 %v1389_v2, %s1566_s10  ;;  %v1391_v24 = vpop.eup %1390 }
 0x9a9   :  { %v1393_v25 = vpop.eup %1392  ;;  %v624_v26 = vadd.f32 1.0, %v1391_v24 }
 0x9aa   :  { %v648_v27 = vadd.f32 1.0, %v1393_v25 }
 0x9ab   :  { %1394 = vrcp.f32 %v624_v26 }
 0x9ac   :  { %1396 = vrcp.f32 %v648_v27 }
 0x9b8   :  { %v1395_v28 = vpop.eup %1394 }
 0x9b9   :  { %v1397_v31 = vpop.eup %1396  ;;  %v628_v34 = vmul.f32 %v1395_v28, %v1752_v41 }
 0x9ba   :  { %v652_v37 = vmul.f32 %v1397_v31, %v1756_v44 }
 0xa18   :  { %v631_v29 = vpop.permute.xlu1 %630 }
 0xa19   :  { %v633_v30 = vmul.f32 %v1395_v28, %v631_v29 }
 0xa1a   :  { %v655_v32 = vpop.permute.xlu0 %654 }
 0xa1b   :  { %635 = vrot.lane.b32.xlu1 %v633_v30, %s1565_s0  ;;  %v657_v33 = vmul.f32 %v1397_v31, %v655_v32 }
 0xa1d   :  { %659 = vrot.lane.b32.xlu0 %v657_v33, %s1565_s0 }
 0xa8d   :  { %v636_v35 = vpop.permute.xlu1 %635 }
 0xa8e   :  { %v1789_v36 = vadd.f32 %v636_v35, %v628_v34 }
 0xa8f   :  { %v660_v38 = vpop.permute.xlu0 %659 }
 0xa90   :  { %1398 = vtanh.f32 %v1789_v36  ;;  %v1793_v39 = vadd.f32 %v660_v38, %v652_v37 }
 0xa92   :  { %1400 = vtanh.f32 %v1793_v39 }
 0xa9d   :  { %v1399_v40 = vpop.eup %1398 }
 0xa9e   :  { %641 = vrot.lane.b32.xlu1 %v1399_v40, %s1566_s10 }
 0xa9f   :  { %v1401_v42 = vpop.eup %1400 }
 0xaa0   :  { %665 = vrot.lane.b32.xlu0 %v1401_v42, %s1566_s10 }
 0xb10   :  { %v642_v43 = vpop.permute.xlu1 %641 }
 0xb11   :  { %v644_v41 = vmul.f32 %v1395_v28, %v642_v43 }
 0xb12   :  { %v666_v46 = vpop.permute.xlu0 %665 }
 0xb13   :  { %v676_v45 = vrot.slane %v644_v41, %v1685_v61  ;;  %v668_v48 = vmul.f32 %v1397_v31, %v666_v46 }
 0xb15   :  { %677 = vrot.lane.b32.xlu1 %v676_v45, %s1565_s0  ;;  %v1801_v44 = vrot.slane %v668_v48, %v1685_v61 }
 0xb17   :  { %697 = vrot.lane.b32.xlu0 %v1801_v44, %s1566_s10 }
 0xb87   :  { %v1805_v47 = vpop.permute.xlu1 %677 }
 0xb89   :  { %v698_v50 = vpop.permute.xlu0 %697 }
 0xb8a   :  { %v700_v53 = vsel %vm100_vm1, %v1805_v47, %v698_v50 }
 0xb8b   :  { %v701_v54 = vpack.c.bf16 %v700_v53, %v700_v53 }
 0xb8d   :  { %1299 = vmatmul.mubr.msk.bf16.vlgmr.msra.gmra.mxu0 %vm143_vm2, %v701_v54  ;;  %v825_v54 = vld [vmem:[#allocation8 + $0x5] sm:$0x1] }
 0xb8e   :  { %976 = vmatpush1.bf16.msra.mxu0 %v1613_v4  ;;  %999 = vmatprep.mubr.bf16.mxu0 %v1564_v1  ;;  %v877_v56 = vunpack.c.l.bf16 %v825_v54 }
 0xb8f   :  { %977 = vmatprep.subr.bf16.mxu0 %v1617_v5 }
 0xb92   :  { %978 = vmatpush1.bf16.msra.mxu0 %v1620_v6 }
 0xb93   :  { %979 = vmatprep.subr.bf16.mxu0 %v1624_v7 }
 0xb96   :  { %980 = vmatpush1.bf16.msra.mxu0 %v1629_v8 }
 0xb97   :  { %981 = vmatprep.subr.bf16.mxu0 %v1632_v9 }
 0xb9a   :  { %982 = vmatpush1.bf16.msra.mxu0 %v1637_v10 }
 0xc4d   :  { %v739_v60 = vpop.f32.mrf.mxu0 }
 0xc4e   :  { %v747_v62 = vadd.f32 %v746_v57, %v739_v60  ;;  %v880_v57 = vunpack.c.l.bf16 %v827_v49 }
 0xc4f   :  { %v741_v63 = vpop.f32.mrf.mxu0 }
 0xc50   :  { %v748_v0 = vadd.f32 %v1660_v19, %v747_v62  ;;  %v750_v3 = vadd.f32 %v749_v58, %v741_v63 }
 0xc51   :  { %v743_v11 = vpop.f32.mrf.mxu0 }
 0xc52   :  { %1402 = vtanh.f32 %v748_v0  ;;  %v751_v14 = vadd.f32 %v1665_v22, %v750_v3  ;;  %v1300_v18 = vmul.f32 -1.442695, %v748_v0 }
 0xc53   :  { %v744_v15 = vpop.f32.mrf.mxu0 }
 0xc54   :  { %1404 = vtanh.f32 %v751_v14  ;;  %v1301_v20 = vmul.f32 -1.442695, %v751_v14 }
 0xc55   :  { %1406 = vpow2.f32 %v1300_v18 }
 0xc56   :  { %1408 = vpow2.f32 %v1301_v20 }
 0xc5f   :  { %v1403_v16 = vpop.eup %1402 }
 0xc60   :  { %761 = vrot.lane.b32.xlu1 %v1403_v16, %s1566_s10 }
 0xc61   :  { %v1405_v17 = vpop.eup %1404 }
 0xc62   :  { %785 = vrot.lane.b32.xlu0 %v1405_v17, %s1566_s10  ;;  %v1407_v2 = vpop.eup %1406 }
 0xc63   :  { %v1409_v21 = vpop.eup %1408  ;;  %v755_v23 = vadd.f32 1.0, %v1407_v2 }
 0xc64   :  { %v779_v24 = vadd.f32 1.0, %v1409_v21 }
 0xc65   :  { %1410 = vrcp.f32 %v755_v23 }
 0xc66   :  { %1412 = vrcp.f32 %v779_v24 }
 0xc72   :  { %v1411_v25 = vpop.eup %1410 }
 0xc73   :  { %v1413_v28 = vpop.eup %1412  ;;  %v759_v31 = vmul.f32 %v1411_v25, %v1789_v36 }
 0xc74   :  { %v783_v34 = vmul.f32 %v1413_v28, %v1793_v39 }
 0xcd2   :  { %v762_v26 = vpop.permute.xlu1 %761 }
 0xcd3   :  { %v764_v27 = vmul.f32 %v1411_v25, %v762_v26 }
 0xcd4   :  { %v786_v29 = vpop.permute.xlu0 %785 }
 0xcd5   :  { %766 = vrot.lane.b32.xlu1 %v764_v27, %s1565_s0  ;;  %v788_v30 = vmul.f32 %v1413_v28, %v786_v29 }
 0xcd7   :  { %790 = vrot.lane.b32.xlu0 %v788_v30, %s1565_s0 }
 0xd47   :  { %v767_v32 = vpop.permute.xlu1 %766 }
 0xd48   :  { %v1825_v33 = vadd.f32 %v767_v32, %v759_v31 }
 0xd49   :  { %v791_v35 = vpop.permute.xlu0 %790 }
 0xd4a   :  { %1414 = vtanh.f32 %v1825_v33  ;;  %v1829_v37 = vadd.f32 %v791_v35, %v783_v34 }
 0xd4c   :  { %1416 = vtanh.f32 %v1829_v37 }
 0xd57   :  { %v1415_v38 = vpop.eup %1414 }
 0xd58   :  { %772 = vrot.lane.b32.xlu1 %v1415_v38, %s1566_s10 }
 0xd59   :  { %v1417_v40 = vpop.eup %1416 }
 0xd5a   :  { %796 = vrot.lane.b32.xlu0 %v1417_v40, %s1566_s10 }
 0xdca   :  { %v773_v42 = vpop.permute.xlu1 %772 }
 0xdcb   :  { %v775_v36 = vmul.f32 %v1411_v25, %v773_v42 }
 0xdcc   :  { %v797_v41 = vpop.permute.xlu0 %796 }
 0xdcd   :  { %v807_v43 = vrot.slane %v775_v36, %v1685_v61  ;;  %v799_v45 = vmul.f32 %v1413_v28, %v797_v41  ;;  %v956_v36 = vld [vmem:[#allocation8 + $0x6] sm:$0x1] }
 0xdce   :  { %v1008_v41 = vunpack.c.l.bf16 %v956_v36 }
 0xdcf   :  { %808 = vrot.lane.b32.xlu1 %v807_v43, %s1565_s0  ;;  %v1837_v39 = vrot.slane %v799_v45, %v1685_v61  ;;  %v958_v43 = vld [vmem:[#allocation11 + $0x1] sm:$0x1] }
 0xdd0   :  { %v1011_v45 = vunpack.c.l.bf16 %v958_v43 }
 0xdd1   :  { %828 = vrot.lane.b32.xlu0 %v1837_v39, %s1566_s10 }
 0xe41   :  { %v1841_v46 = vpop.permute.xlu1 %808 }
 0xe43   :  { %v829_v48 = vpop.permute.xlu0 %828 }
 0xe44   :  { %v831_v50 = vsel %vm100_vm1, %v1841_v46, %v829_v48 }
 0xe45   :  { %v832_v53 = vpack.c.bf16 %v831_v50, %v831_v50 }
 0xe47   :  { %1302 = vmatmul.mubr.msk.bf16.vlgmr.msra.gmra.mxu1 %vm143_vm2, %v832_v53 }
 0xe48   :  { %1106 = vmatpush1.bf16.msra.mxu1 %v1613_v4  ;;  %1129 = vmatprep.mubr.bf16.mxu1 %v1564_v1 }
 0xe49   :  { %1107 = vmatprep.subr.bf16.mxu1 %v1617_v5 }
 0xe4c   :  { %1108 = vmatpush1.bf16.msra.mxu1 %v1620_v6 }
 0xe4d   :  { %1109 = vmatprep.subr.bf16.mxu1 %v1624_v7 }
 0xe50   :  { %1110 = vmatpush1.bf16.msra.mxu1 %v1629_v8 }
 0xe51   :  { %1111 = vmatprep.subr.bf16.mxu1 %v1632_v9 }
 0xe54   :  { %1112 = vmatpush1.bf16.msra.mxu1 %v1637_v10 }
 0xf07   :  { %v870_v58 = vpop.f32.mrf.mxu1 }
 0xf08   :  { %v878_v4 = vadd.f32 %v877_v56, %v870_v58 }
 0xf09   :  { %v872_v60 = vpop.f32.mrf.mxu1 }
 0xf0a   :  { %v879_v1 = vadd.f32 %v1660_v19, %v878_v4  ;;  %v881_v5 = vadd.f32 %v880_v57, %v872_v60 }
 0xf0b   :  { %v874_v62 = vpop.f32.mrf.mxu1 }
 0xf0c   :  { %1418 = vtanh.f32 %v879_v1  ;;  %v882_v6 = vadd.f32 %v1665_v22, %v881_v5  ;;  %v1303_v10 = vmul.f32 -1.442695, %v879_v1 }
 0xf0d   :  { %v875_v7 = vpop.f32.mrf.mxu1 }
 0xf0e   :  { %1420 = vtanh.f32 %v882_v6  ;;  %v1304_v63 = vmul.f32 -1.442695, %v882_v6 }
 0xf0f   :  { %1422 = vpow2.f32 %v1303_v10 }
 0xf10   :  { %1424 = vpow2.f32 %v1304_v63 }
 0xf19   :  { %v1419_v8 = vpop.eup %1418 }
 0xf1a   :  { %892 = vrot.lane.b32.xlu1 %v1419_v8, %s1566_s10 }
 0xf1b   :  { %v1421_v9 = vpop.eup %1420 }
 0xf1c   :  { %916 = vrot.lane.b32.xlu0 %v1421_v9, %s1566_s10  ;;  %v1423_v0 = vpop.eup %1422 }
 0xf1d   :  { %v1425_v3 = vpop.eup %1424  ;;  %v886_v11 = vadd.f32 1.0, %v1423_v0 }
 0xf1e   :  { %v910_v14 = vadd.f32 1.0, %v1425_v3 }
 0xf1f   :  { %1426 = vrcp.f32 %v886_v11 }
 0xf20   :  { %1428 = vrcp.f32 %v910_v14 }
 0xf2c   :  { %v1427_v15 = vpop.eup %1426 }
 0xf2d   :  { %v1429_v18 = vpop.eup %1428  ;;  %v890_v21 = vmul.f32 %v1427_v15, %v1825_v33 }
 0xf2e   :  { %v914_v25 = vmul.f32 %v1429_v18, %v1829_v37 }
 0xf8c   :  { %v893_v16 = vpop.permute.xlu1 %892 }
 0xf8d   :  { %v895_v17 = vmul.f32 %v1427_v15, %v893_v16 }
 0xf8e   :  { %v917_v20 = vpop.permute.xlu0 %916 }
 0xf8f   :  { %897 = vrot.lane.b32.xlu1 %v895_v17, %s1565_s0  ;;  %v919_v2 = vmul.f32 %v1429_v18, %v917_v20 }
 0xf91   :  { %921 = vrot.lane.b32.xlu0 %v919_v2, %s1565_s0 }
0x1001   :  { %v898_v23 = vpop.permute.xlu1 %897 }
0x1002   :  { %v900_v24 = vadd.f32 %v898_v23, %v890_v21 }
0x1003   :  { %v922_v26 = vpop.permute.xlu0 %921 }
0x1004   :  { %1430 = vtanh.f32 %v900_v24  ;;  %v924_v27 = vadd.f32 %v922_v26, %v914_v25 }
0x1006   :  { %1432 = vtanh.f32 %v924_v27 }
0x1011   :  { %v1431_v28 = vpop.eup %1430 }
0x1012   :  { %903 = vrot.lane.b32.xlu1 %v1431_v28, %s1566_s10 }
0x1013   :  { %v1433_v29 = vpop.eup %1432 }
0x1014   :  { %927 = vrot.lane.b32.xlu0 %v1433_v29, %s1566_s10 }
0x1084   :  { %v904_v30 = vpop.permute.xlu1 %903 }
0x1085   :  { %v906_v31 = vmul.f32 %v1427_v15, %v904_v30 }
0x1086   :  { %v928_v34 = vpop.permute.xlu0 %927 }
0x1087   :  { %v938_v32 = vrot.slane %v906_v31, %v1685_v61  ;;  %v930_v33 = vmul.f32 %v1429_v18, %v928_v34  ;;  %v1087_v34 = vld [vmem:[#allocation8 + $0x7] sm:$0x1] }
0x1089   :  { %939 = vrot.lane.b32.xlu1 %v938_v32, %s1565_s0  ;;  %v1867_v35 = vrot.slane %v930_v33, %v1685_v61  ;;  %v1088_v33 = vld [vmem:[#allocation11] sm:$0x1] }
0x108b   :  { %959 = vrot.lane.b32.xlu0 %v1867_v35, %s1566_s10 }
0x10fb   :  { %v1871_v37 = vpop.permute.xlu1 %939 }
0x10fd   :  { %v960_v38 = vpop.permute.xlu0 %959 }
0x10fe   :  { %v962_v40 = vsel %vm100_vm1, %v1871_v37, %v960_v38  ;;  %v1138_v38 = vunpack.c.l.bf16 %v1087_v34 }
0x10ff   :  { %v963_v42 = vpack.c.bf16 %v962_v40, %v962_v40  ;;  %v1141_v40 = vunpack.c.l.bf16 %v1088_v33 }
0x1101   :  { %1305 = vmatmul.mubr.msk.bf16.vlgmr.msra.gmra.mxu0 %vm143_vm2, %v963_v42 }
0x11c1   :  { %v1001_v48 = vpop.f32.mrf.mxu0 }
0x11c2   :  { %v1009_v50 = vadd.f32 %v1008_v41, %v1001_v48 }
0x11c3   :  { %v1003_v53 = vpop.f32.mrf.mxu0 }
0x11c4   :  { %v1010_v54 = vadd.f32 %v1660_v19, %v1009_v50  ;;  %v1012_v49 = vadd.f32 %v1011_v45, %v1003_v53 }
0x11c5   :  { %v1005_v56 = vpop.f32.mrf.mxu0 }
0x11c6   :  { %1434 = vtanh.f32 %v1010_v54  ;;  %v1013_v57 = vadd.f32 %v1665_v22, %v1012_v49  ;;  %v1306_v1 = vmul.f32 -1.442695, %v1010_v54 }
0x11c7   :  { %v1006_v58 = vpop.f32.mrf.mxu0 }
0x11c8   :  { %1436 = vtanh.f32 %v1013_v57  ;;  %v1307_v5 = vmul.f32 -1.442695, %v1013_v57 }
0x11c9   :  { %1438 = vpow2.f32 %v1306_v1 }
0x11ca   :  { %1440 = vpow2.f32 %v1307_v5 }
0x11d3   :  { %v1435_v4 = vpop.eup %1434 }
0x11d4   :  { %1023 = vrot.lane.b32.xlu1 %v1435_v4, %s1566_s10 }
0x11d5   :  { %v1437_v60 = vpop.eup %1436 }
0x11d6   :  { %1047 = vrot.lane.b32.xlu0 %v1437_v60, %s1566_s10  ;;  %v1439_v62 = vpop.eup %1438 }
0x11d7   :  { %v1441_v6 = vpop.eup %1440  ;;  %v1017_v7 = vadd.f32 1.0, %v1439_v62 }
0x11d8   :  { %v1041_v8 = vadd.f32 1.0, %v1441_v6 }
0x11d9   :  { %1442 = vrcp.f32 %v1017_v7 }
0x11da   :  { %1444 = vrcp.f32 %v1041_v8 }
0x11e6   :  { %v1443_v9 = vpop.eup %1442 }
0x11e7   :  { %v1445_v0 = vpop.eup %1444  ;;  %v1021_v14 = vmul.f32 %v1443_v9, %v900_v24 }
0x11e8   :  { %v1045_v17 = vmul.f32 %v1445_v0, %v924_v27 }
0x1246   :  { %v1024_v10 = vpop.permute.xlu1 %1023 }
0x1247   :  { %v1026_v63 = vmul.f32 %v1443_v9, %v1024_v10 }
0x1248   :  { %v1048_v3 = vpop.permute.xlu0 %1047 }
0x1249   :  { %1028 = vrot.lane.b32.xlu1 %v1026_v63, %s1565_s0  ;;  %v1050_v11 = vmul.f32 %v1445_v0, %v1048_v3 }
0x124b   :  { %1052 = vrot.lane.b32.xlu0 %v1050_v11, %s1565_s0 }
0x12bb   :  { %v1029_v15 = vpop.permute.xlu1 %1028 }
0x12bc   :  { %v1882_v16 = vadd.f32 %v1029_v15, %v1021_v14 }
0x12bd   :  { %v1053_v18 = vpop.permute.xlu0 %1052 }
0x12be   :  { %1446 = vtanh.f32 %v1882_v16  ;;  %v1055_v20 = vadd.f32 %v1053_v18, %v1045_v17 }
0x12c0   :  { %1448 = vtanh.f32 %v1055_v20 }
0x12cb   :  { %v1447_v2 = vpop.eup %1446 }
0x12cc   :  { %1034 = vrot.lane.b32.xlu1 %v1447_v2, %s1566_s10 }
0x12cd   :  { %v1449_v21 = vpop.eup %1448 }
0x12ce   :  { %1058 = vrot.lane.b32.xlu0 %v1449_v21, %s1566_s10 }
0x133e   :  { %v1035_v23 = vpop.permute.xlu1 %1034 }
0x133f   :  { %v1037_v25 = vmul.f32 %v1443_v9, %v1035_v23 }
0x1340   :  { %v1059_v24 = vpop.permute.xlu0 %1058 }
0x1341   :  { %v1069_v26 = vrot.slane %v1037_v25, %v1685_v61  ;;  %v1061_v28 = vmul.f32 %v1445_v0, %v1059_v24 }
0x1343   :  { %1070 = vrot.lane.b32.xlu1 %v1069_v26, %s1565_s0  ;;  %v1081_v27 = vrot.slane %v1061_v28, %v1685_v61 }
0x1345   :  { %1089 = vrot.lane.b32.xlu0 %v1081_v27, %s1566_s10 }
0x13b5   :  { %v1891_v29 = vpop.permute.xlu1 %1070 }
0x13b7   :  { %v1090_v30 = vpop.permute.xlu0 %1089 }
0x13b8   :  { %v1092_v31 = vsel %vm100_vm1, %v1891_v29, %v1090_v30 }
0x13b9   :  { %v1093_v32 = vpack.c.bf16 %v1092_v31, %v1092_v31 }
0x13bb   :  { %1308 = vmatmul.mubr.msk.bf16.vlgmr.msra.gmra.mxu1 %vm143_vm2, %v1093_v32 }
0x147b   :  { %v1131_v42 = vpop.f32.mrf.mxu1 }
0x147c   :  { %v1139_v36 = vadd.f32 %v1138_v38, %v1131_v42 }
0x147d   :  { %v1133_v43 = vpop.f32.mrf.mxu1 }
0x147e   :  { %v1140_v41 = vadd.f32 %v1660_v19, %v1139_v36  ;;  %v1142_v45 = vadd.f32 %v1141_v40, %v1133_v43 }
0x147f   :  { %v1135_v48 = vpop.f32.mrf.mxu1 }
0x1480   :  { %1450 = vtanh.f32 %v1140_v41  ;;  %v1143_v50 = vadd.f32 %v1665_v22, %v1142_v45  ;;  %v1309_v56 = vmul.f32 -1.442695, %v1140_v41 }
0x1481   :  { %v1136_v53 = vpop.f32.mrf.mxu1 }
0x1482   :  { %1452 = vtanh.f32 %v1143_v50  ;;  %v1310_v57 = vmul.f32 -1.442695, %v1143_v50 }
0x1483   :  { %1454 = vpow2.f32 %v1309_v56 }
0x1484   :  { %1456 = vpow2.f32 %v1310_v57 }
0x148d   :  { %v1451_v54 = vpop.eup %1450 }
0x148e   :  { %1153 = vrot.lane.b32.xlu0 %v1451_v54, %s1566_s10 }
0x148f   :  { %v1453_v49 = vpop.eup %1452 }
0x1490   :  { %1177 = vrot.lane.b32.xlu1 %v1453_v49, %s1566_s10  ;;  %v1455_v58 = vpop.eup %1454 }
0x1491   :  { %v1457_v4 = vpop.eup %1456  ;;  %v1147_v19 = vadd.f32 1.0, %v1455_v58 }
0x1492   :  { %v1171_v60 = vadd.f32 1.0, %v1457_v4 }
0x1493   :  { %1458 = vrcp.f32 %v1147_v19 }
0x1494   :  { %1460 = vrcp.f32 %v1171_v60 }
0x14a0   :  { %v1459_v1 = vpop.eup %1458 }
0x14a1   :  { %v1461_v62 = vpop.eup %1460  ;;  %v1151_v0 = vmul.f32 %v1459_v1, %v1882_v16 }
0x14a2   :  { %v1175_v8 = vmul.f32 %v1461_v62, %v1055_v20 }
0x1500   :  { %v1154_v22 = vpop.permute.xlu0 %1153 }
0x1501   :  { %v1156_v5 = vmul.f32 %v1459_v1, %v1154_v22 }
0x1502   :  { %v1178_v6 = vpop.permute.xlu1 %1177 }
0x1503   :  { %1158 = vrot.lane.b32.xlu0 %v1156_v5, %s1565_s0  ;;  %v1180_v7 = vmul.f32 %v1461_v62, %v1178_v6 }
0x1505   :  { %1182 = vrot.lane.b32.xlu1 %v1180_v7, %s1565_s0 }
0x1507   :  { %296 = vrot.lane.b32.xlu0 %v1690_v12, %s1565_s0 }
0x150b   :  { %558 = vrot.lane.b32.xlu0 %v1764_v51, %s1565_s0  ;;  %v92_v51 = vld [vmem:[#allocation7] sm:$0x3] }
0x150f   :  { %820 = vrot.lane.b32.xlu0 %v1837_v39, %s1565_s0 }
0x1513   :  { %951 = vrot.lane.b32.xlu0 %v1867_v35, %s1565_s0 }
0x1575   :  { %v1159_v63 = vpop.permute.xlu0 %1158 }
0x1576   :  { %v1161_v3 = vadd.f32 %v1159_v63, %v1151_v0 }
0x1577   :  { %v1183_v9 = vpop.permute.xlu1 %1182 }
0x1578   :  { %v1185_v10 = vadd.f32 %v1183_v9, %v1175_v8  ;;  %v1225_v26 = vrot.slane %v1161_v3, %v1685_v61 }
0x1579   :  { %v297_v39 = vpop.permute.xlu0 %296 }
0x157a   :  { %1462 = vtanh.f32 %v1185_v10  ;;  %v299_v15 = vmax.f32 %v92_v51, %v297_v39 }
0x157b   :  { %1464 = vtanh.f32 %v1161_v3 }
0x1587   :  { %v1463_v11 = vpop.eup %1462 }
0x1588   :  { %1188 = vrot.lane.b32.xlu1 %v1463_v11, %s1566_s10  ;;  %v1465_v12 = vpop.eup %1464 }
0x158c   :  { %427 = vrot.lane.b32.xlu1 %v1727_v52, %s1565_s0  ;;  %v559_v52 = vpop.permute.xlu0 %558 }
0x1590   :  { %689 = vrot.lane.b32.xlu1 %v1801_v44, %s1565_s0  ;;  %v821_v24 = vpop.permute.xlu0 %820 }
0x1594   :  { %1164 = vrot.lane.b32.xlu1 %v1465_v12, %s1566_s10  ;;  %v952_v30 = vpop.permute.xlu0 %951 }
0x1598   :  { %1082 = vrot.lane.b32.xlu1 %v1081_v27, %s1565_s0  ;;  %v91_v27 = vld [vmem:[#allocation6] sm:$0x3] }
0x1599   :  { %v287_v34 = vmax.f32 %v91_v27, %v1694_v13 }
0x159b   :  { %v418_v40 = vmax.f32 %v287_v34, %v1731_v59 }
0x159d   :  { %v549_v36 = vmax.f32 %v418_v40, %v1768_v55 }
0x159f   :  { %v680_v43 = vmax.f32 %v549_v36, %v1805_v47  ;;  %v1238_v47 = vrot.slane %v1185_v10, %v1685_v61 }
0x15a1   :  { %v811_v41 = vmax.f32 %v680_v43, %v1841_v46 }
0x15a3   :  { %v942_v45 = vmax.f32 %v811_v41, %v1871_v37 }
0x15a5   :  { %v1073_v13 = vmax.f32 %v942_v45, %v1891_v29 }
0x15fa   :  { %v1189_v35 = vpop.permute.xlu1 %1188 }
0x15fb   :  { %v1191_v14 = vmul.f32 %v1461_v62, %v1189_v35 }
0x15fd   :  { %v1211_v16 = vrot.slane %v1191_v14, %v1685_v61 }
0x15fe   :  { %v428_v17 = vpop.permute.xlu1 %427 }
0x15ff   :  { %v430_v18 = vmax.f32 %v299_v15, %v428_v17  ;;  %1212 = vrot.lane.b32.xlu0 %v1211_v16, %s1565_s0 }
0x1601   :  { %v561_v20 = vmax.f32 %v430_v18, %v559_v52 }
0x1602   :  { %v690_v2 = vpop.permute.xlu1 %689 }
0x1603   :  { %v692_v44 = vmax.f32 %v561_v20, %v690_v2 }
0x1605   :  { %v823_v28 = vmax.f32 %v692_v44, %v821_v24 }
0x1606   :  { %v1165_v21 = vpop.permute.xlu1 %1164 }
0x1607   :  { %v1167_v23 = vmul.f32 %v1459_v1, %v1165_v21  ;;  %v954_v32 = vmax.f32 %v823_v28, %v952_v30 }
0x1609   :  { %v1199_v25 = vrot.slane %v1167_v23, %v1685_v61 }
0x160a   :  { %v1083_v31 = vpop.permute.xlu1 %1082 }
0x160b   :  { %1200 = vrot.lane.b32.xlu1 %v1199_v25, %s1565_s0  ;;  %v1085_v33 = vmax.f32 %v954_v32, %v1083_v31 }
0x160f   :  { %1226 = vrot.lane.b32.xlu1 %v1225_v26, %s1569_s2 }
0x1671   :  { %v1213_v38 = vpop.permute.xlu0 %1212 }
0x1672   :  { %v1215_v42 = vmax.f32 %v1085_v33, %v1213_v38  ;;  %1230 = vst.msk [vmem:[#allocation4] sm:$0x3] %vm70_vm0, %v1213_v38 }
0x1674   :  { %1244 = vst.msk [vmem:[#allocation7] sm:$0x3] %vm70_vm0, %v1215_v42  ;;  %1466 = vtanh.f32 %v1215_v42 }
0x167d   :  { %v1201_v48 = vpop.permute.xlu1 %1200 }
0x167e   :  { %v1203_v50 = vmax.f32 %v1073_v13, %v1201_v48  ;;  %1217 = vst.msk [vmem:[#allocation2] sm:$0x3] %vm70_vm0, %v1201_v48 }
0x1680   :  { %1243 = vst.msk [vmem:[#allocation6] sm:$0x3] %vm70_vm0, %v1203_v50  ;;  %1468 = vtanh.f32 %v1203_v50 }
0x1681   :  { %v1467_v59 = vpop.eup %1466  ;;  %v1227_v55 = vpop.permute.xlu1 %1226 }
0x1682   :  { %1229 = vst.msk [vmem:[#allocation3] sm:$0x3] %vm70_vm0, %v1227_v55  ;;  %1252 = vrot.lane.b32.xlu0 %v1467_v59, %s1565_s0 }
0x1686   :  { %1239 = vrot.lane.b32.xlu0 %v1238_v47, %s1569_s2 }
0x168d   :  { %v1469_v46 = vpop.eup %1468 }
0x168e   :  { %1249 = vst.msk [vmem:[#allocation14] sm:$0x3] %vm70_vm0, %v1469_v46 }
0x16f4   :  { %v1253_v37 = vpop.permute.xlu0 %1252 }
0x16f5   :  { %1256 = vst.msk [vmem:[#allocation14] sm:$0x3] %vm1255_vm3, %v1253_v37 }
0x16f6   :  { %1541 = shalt.err (!%p1538_p5)
}
0x16f7   :  { %1266 = dma.vmem_to_hbm [thread:$0]  %s1264_s12, 32, %s1948_s4, [#allocation10]  }
0x16f8   :  { %v1240_v61 = vpop.permute.xlu0 %1239 }
0x16f9   :  { %1242 = vst.msk [vmem:[#allocation5] sm:$0x3] %vm70_vm0, %v1240_v61 }
0x16fa   :  { %1554 = dma.done.wait [#allocation10], 32  }
0x16fb   :  { %1555 = vsyncadd [#allocation10], 4294967264 }
0x16fc   :  { %1270 = vsyncpa [#allocation9], 1 }
0x16fd   :  { %1271 = vsyncpa [#allocation12], 1 }
0x16fe   :  { %1272 = vsyncpa [#allocation10], 1 }

</bundles_post_ra>
